<compile_context>
chip_gen: v5e
topology: v5e:2x2
jax: 0.10.0
libtpu: 0.0.40
codegen_flags: <defaults>
</compile_context>

<pallas_src>
import functools

import jax
import jax.numpy as jnp
from jax.experimental import pallas as pl
from jax.experimental.pallas import tpu as pltpu

_LDJ_W = 128                      # lane-dense width for the ldj-delta output block
_VMEM_BUDGET = 48 * 1024 * 1024   # portable across v5e/v6e (128 MiB) and v7x (64 MiB/TC)

_single_buffer_weights_ok = None  # None = unknown, probed on first pallas_call


def _round_up(x, m):
    return ((x + m - 1) // m) * m


def _choose_tm(batch, block_rows, min_steps=2, max_waste=0.125):
    """Pick a batch tile: >=2 grid steps when the batch allows (v7x megacore + DMA
    pipelining) and <=~12.5% padded-row waste (MXU-bound: padded rows are pure loss)."""
    assert block_rows % 8 == 0 and block_rows >= 8
    b8 = _round_up(batch, 8)
    if b8 // 8 < min_steps:            # batch too small for more than one grid step
        return b8
    candidates = []
    tm = block_rows
    while tm >= 16:
        candidates.append(tm)
        tm = max(8, (tm // 2) // 8 * 8)
    candidates.append(8)
    for tm in candidates:
        bp = _round_up(batch, tm)
        if bp // tm >= min_steps and (bp - batch) / bp <= max_waste:
            return tm
    return 8


def _vmem_bytes(tm, c_pad, h_pad, w_item, weight_buffers, forward):
    """Rough VMEM footprint: resident weights, double-buffered batch blocks, activations."""
    weights = weight_buffers * ((c_pad * h_pad + h_pad * h_pad + h_pad * 2 * c_pad) * w_item
                                + (2 * h_pad + 2 * c_pad) * 4)
    io = 2 * tm * c_pad * 4            # z in   (double-buffered)
    io += 2 * tm * c_pad * 4           # z out  (double-buffered)
    if forward:
        io += 2 * tm * _LDJ_W * 4      # ldj-delta out (double-buffered)
    act = 2 * tm * h_pad * 4 + tm * 2 * c_pad * 4   # hidden activations + fused head
    return weights + io + act


def _coupling_kernel(z_ref, mask_ref, w1_ref, b1_ref, w2_ref, b2_ref,
                     wts_ref, bts_ref, *out_refs,
                     c_pad: int, reverse: bool, matmul_dtype):
    z = z_ref[...]                     # (TM, Cp) f32
    mask = mask_ref[...]               # (1, Cp)  f32, broadcasts over batch rows
    inv_mask = 1.0 - mask
    z_masked = mask * z

    # hidden = ReLU(Linear(ReLU(Linear(z_masked))))   (f32 accumulation on the MXU)
    h = jnp.dot(z_masked.astype(matmul_dtype), w1_ref[...],
                preferred_element_type=jnp.float32) + b1_ref[...]
    h = jnp.maximum(h, 0.0)
    h = jnp.dot(h.astype(matmul_dtype), w2_ref[...],
                preferred_element_type=jnp.float32) + b2_ref[...]
    h = jnp.maximum(h, 0.0)

    # Fused translate / logscale heads: one (Hp, 2*Cp) matmul, tile-aligned slices.
    ts = jnp.dot(h.astype(matmul_dtype), wts_ref[...],
                 preferred_element_type=jnp.float32) + bts_ref[...]
    translate = ts[:, :c_pad]
    logscale = jnp.tanh(ts[:, c_pad:])

    if not reverse:
        z_out_ref, ldj_out_ref = out_refs
        z_out_ref[...] = z_masked + inv_mask * (z * jnp.exp(logscale) + translate)
        ldj_delta = jnp.sum(inv_mask * logscale, axis=1, keepdims=True)   # (TM, 1)
        ldj_out_ref[...] = jnp.broadcast_to(ldj_delta, ldj_out_ref.shape)  # lane-dense store
    else:
        (z_out_ref,) = out_refs
        z_out_ref[...] = z_masked + inv_mask * (z - translate) * jnp.exp(-logscale)


def prepare_coupling_params(params, mask, matmul_dtype=jnp.bfloat16):
    """One-time padding + head fusion, hoisted out of the per-call path.

    params: dict of pre-transposed Linear weights (in_features, out_features) and (1, out)
    biases. mask: (C,) float. Padded columns/rows are exact zeros, so they contribute 0
    to z_out and to ldj. Weights are stored in `matmul_dtype` (bf16 by default), biases f32.
    """
    C, H = params["w1"].shape
    Cp = _round_up(C, 128)
    Hp = _round_up(H, 128)
    mdt = matmul_dtype
    f32 = jnp.float32

    maskp = jnp.zeros((1, Cp), f32).at[0, :C].set(mask.astype(f32))
    w1p = jnp.zeros((Cp, Hp), mdt).at[:C, :H].set(params["w1"].astype(mdt))
    b1p = jnp.zeros((1, Hp), f32).at[:, :H].set(params["b1"].astype(f32))
    w2p = jnp.zeros((Hp, Hp), mdt).at[:H, :H].set(params["w2"].astype(mdt))
    b2p = jnp.zeros((1, Hp), f32).at[:, :H].set(params["b2"].astype(f32))
    # Fused heads: translate weights in columns [0, C), logscale weights in [Cp, Cp+C).
    wts = (jnp.zeros((Hp, 2 * Cp), mdt)
           .at[:H, :C].set(params["wt"].astype(mdt))
           .at[:H, Cp:Cp + C].set(params["ws"].astype(mdt)))
    bts = (jnp.zeros((1, 2 * Cp), f32)
           .at[:, :C].set(params["bt"].astype(f32))
           .at[:, Cp:Cp + C].set(params["bs"].astype(f32)))
    return {
        "C": C, "H": H, "Cp": Cp, "Hp": Hp, "matmul_dtype": mdt,
        "mask": maskp, "w1": w1p, "b1": b1p, "w2": w2p, "b2": b2p,
        "wts": wts, "bts": bts,
    }


def coupling_forward(z, ldj, prepared, *, reverse=False, block_rows=512):
    """Pallas implementation of Coupling.forward.

    z: (B, C) float, ldj: (B,) float, prepared: output of prepare_coupling_params.
    Returns (z_out (B, C), ldj_out (B,)).
    """
    global _single_buffer_weights_ok

    B, C = z.shape
    assert C == prepared["C"], "feature dim mismatch with prepared params"
    Cp, Hp = prepared["Cp"], prepared["Hp"]
    mdt = prepared["matmul_dtype"]
    f32 = jnp.float32
    w_item = jnp.dtype(mdt).itemsize

    TM = _choose_tm(B, _round_up(block_rows, 8))
    # Shrink TM if the VMEM estimate (single-buffered weights) exceeds the budget.
    while TM > 8 and _vmem_bytes(TM, Cp, Hp, w_item, 1, not reverse) > _VMEM_BUDGET * 3 // 4:
        TM = max(8, _round_up(TM // 2, 8))
    Bp = _round_up(B, TM)
    grid = (Bp // TM,)

    # Pad z only when needed (batch and feature axes already aligned -> pass through).
    if Bp == B and Cp == C:
        zp = z.astype(f32)
    else:
        zp = jnp.zeros((Bp, Cp), f32).at[:B, :C].set(z.astype(f32))

    def run(weight_buffers):
        vmem_est = _vmem_bytes(TM, Cp, Hp, w_item, weight_buffers, not reverse)
        vmem_limit = int(min(_VMEM_BUDGET, max(vmem_est * 3 // 2, 16 * 1024 * 1024)))

        def const_spec(shape):
            idx = lambda i: (0, 0)
            if weight_buffers == 1:
                # Constant index_map -> the block is never re-fetched, so one buffer is
                # enough; this halves the resident-weight VMEM.
                return pl.BlockSpec(shape, idx, pipeline_mode=pl.Buffered(1))
            return pl.BlockSpec(shape, idx)

        batch_spec = lambda cols: pl.BlockSpec((TM, cols), lambda i: (i, 0))

        in_specs = [
            batch_spec(Cp),                 # z
            const_spec((1, Cp)),            # mask
            const_spec((Cp, Hp)),           # w1
            const_spec((1, Hp)),            # b1
            const_spec((Hp, Hp)),           # w2
            const_spec((1, Hp)),            # b2
            const_spec((Hp, 2 * Cp)),       # fused wt||ws
            const_spec((1, 2 * Cp)),        # fused bt||bs
        ]
        if reverse:
            out_specs = batch_spec(Cp)
            out_shape = jax.ShapeDtypeStruct((Bp, Cp), f32)
        else:
            out_specs = [batch_spec(Cp), batch_spec(_LDJ_W)]
            out_shape = [jax.ShapeDtypeStruct((Bp, Cp), f32),
                         jax.ShapeDtypeStruct((Bp, _LDJ_W), f32)]

        return pl.pallas_call(
            functools.partial(_coupling_kernel, c_pad=Cp, reverse=reverse,
                              matmul_dtype=mdt),
            grid=grid,
            in_specs=in_specs,
            out_specs=out_specs,
            out_shape=out_shape,
            compiler_params=pltpu.CompilerParams(
                dimension_semantics=("parallel",),    # megacore sharding on v7x
                vmem_limit_bytes=vmem_limit,
            ),
        )(zp, prepared["mask"], prepared["w1"], prepared["b1"],
          prepared["w2"], prepared["b2"], prepared["wts"], prepared["bts"])

    if _single_buffer_weights_ok is None:
        try:
            out = run(1)
            _single_buffer_weights_ok = True
        except Exception:
            _single_buffer_weights_ok = False
            out = run(2)
    else:
        out = run(1 if _single_buffer_weights_ok else 2)

    if reverse:
        z_out = out
        ldj_out = jnp.zeros_like(ldj)        # matches the PyTorch module (ldj reset in reverse)
    else:
        z_out, ldj_delta = out
        # ldj input never enters the kernel (no narrow DMA stream); trivial add fused by XLA.
        ldj_out = ldj + ldj_delta[:B, 0]

    if Bp != B or Cp != C:
        z_out = z_out[:B, :C]
    return z_out, ldj_out


def make_coupling_params(key, c_in, n_hidden, head_scale=0.0):
    """Synthetic parameters matching the PyTorch module's __init__.

    nn = Linear(c_in, n_hidden) -> ReLU -> Linear(n_hidden, n_hidden) -> ReLU (random init)
    fc_t / fc_logscale[0] are zero-initialized in the module (head_scale=0.0); a nonzero
    head_scale only exercises the exp/tanh path in the correctness test.
    Weights stored transposed: (in_features, out_features).
    """
    k1, k2, k3, k4, k5, k6 = jax.random.split(key, 6)
    s1 = 1.0 / jnp.sqrt(c_in)
    s2 = 1.0 / jnp.sqrt(n_hidden)
    return {
        "w1": jax.random.uniform(k1, (c_in, n_hidden), jnp.float32, -s1, s1),
        "b1": jax.random.uniform(k2, (1, n_hidden), jnp.float32, -s1, s1),
        "w2": jax.random.uniform(k3, (n_hidden, n_hidden), jnp.float32, -s2, s2),
        "b2": jax.random.uniform(k4, (1, n_hidden), jnp.float32, -s2, s2),
        "wt": head_scale * jax.random.normal(k5, (n_hidden, c_in), jnp.float32),
        "bt": jnp.zeros((1, c_in), jnp.float32),
        "ws": head_scale * jax.random.normal(k6, (n_hidden, c_in), jnp.float32),
        "bs": jnp.zeros((1, c_in), jnp.float32),
    }


def reference_forward(z, ldj, mask, params, *, reverse=False):
    """Pure-JAX reference mirroring the PyTorch forward."""
    z_masked = mask[None, :] * z
    h = jnp.maximum(z_masked @ params["w1"] + params["b1"], 0.0)
    h = jnp.maximum(h @ params["w2"] + params["b2"], 0.0)
    translate = h @ params["wt"] + params["bt"]
    logscale = jnp.tanh(h @ params["ws"] + params["bs"])
    inv = 1.0 - mask[None, :]
    if not reverse:
        z_out = z_masked + inv * (z * jnp.exp(logscale) + translate)
        ldj_out = ldj + jnp.sum(inv * logscale, axis=1)
    else:
        z_out = z_masked + inv * (z - translate) * jnp.exp(-logscale)
        ldj_out = jnp.zeros_like(ldj)
    return z_out, ldj_out


def _check(name, got, want, atol, rtol):
    assert jnp.allclose(got, want, atol=atol, rtol=rtol), f"{name} mismatch vs reference"


if __name__ == "__main__":
    C, H = 16, 128   # c_in, n_hidden (small demo; real module uses n_hidden=1024)

    key = jax.random.PRNGKey(0)
    kz, kldj, kp = jax.random.split(key, 3)

    mask = (jnp.arange(C) % 2).astype(jnp.float32)   # checkerboard mask over features

    # Parameters exercising the full exp/tanh path (heads slightly perturbed from zero).
    params = make_coupling_params(kp, C, H, head_scale=0.05)
    # Parameters exactly matching the PyTorch __init__ (zero-initialized heads).
    params_zero = make_coupling_params(kp, C, H, head_scale=0.0)

    # One-time param prep (hoisted out of the per-call path), bf16 MXU default + f32 opt-in.
    prep_bf16 = prepare_coupling_params(params, mask)                          # bf16 default
    prep_f32 = prepare_coupling_params(params, mask, matmul_dtype=jnp.float32)
    prep_zero_f32 = prepare_coupling_params(params_zero, mask, matmul_dtype=jnp.float32)

    # --- Test 1: f32 forward, multiple grid steps (B=24 -> TM=8, grid=(3,)) ---
    B = 24
    z = jax.random.normal(kz, (B, C), jnp.float32)
    ldj = jax.random.normal(kldj, (B,), jnp.float32)
    z_out, ldj_out = coupling_forward(z, ldj, prep_f32, reverse=False)
    jax.block_until_ready((z_out, ldj_out))
    z_ref, ldj_ref = reference_forward(z, ldj, mask, params, reverse=False)
    _check("z (fwd f32)", z_out, z_ref, atol=1e-4, rtol=1e-5)
    _check("ldj (fwd f32)", ldj_out, ldj_ref, atol=1e-4, rtol=1e-5)

    # --- Test 2: f32 reverse (ldj dropped from the kernel entirely) ---
    z_out, ldj_out = coupling_forward(z, ldj, prep_f32, reverse=True)
    jax.block_until_ready((z_out, ldj_out))
    z_ref, ldj_ref = reference_forward(z, ldj, mask, params, reverse=True)
    _check("z (rev f32)", z_out, z_ref, atol=1e-4, rtol=1e-5)
    _check("ldj (rev f32)", ldj_out, ldj_ref, atol=1e-4, rtol=1e-5)

    # --- Test 3: batch not a multiple of 8 (padding path), zero-init heads ---
    B2 = 10
    z2 = jax.random.normal(kz, (B2, C), jnp.float32)
    ldj2 = jax.random.normal(kldj, (B2,), jnp.float32)
    z_out, ldj_out = coupling_forward(z2, ldj2, prep_zero_f32, reverse=False)
    jax.block_until_ready((z_out, ldj_out))
    z_ref, ldj_ref = reference_forward(z2, ldj2, mask, params_zero, reverse=False)
    _check("z (pad f32)", z_out, z_ref, atol=1e-4, rtol=1e-5)
    _check("ldj (pad f32)", ldj_out, ldj_ref, atol=1e-4, rtol=1e-5)

    # --- Test 4: bf16 MXU default (f32 accumulation / elementwise), looser tolerance ---
    z_out, ldj_out = coupling_forward(z, ldj, prep_bf16, reverse=False)
    jax.block_until_ready((z_out, ldj_out))
    z_ref, ldj_ref = reference_forward(z, ldj, mask, params, reverse=False)
    _check("z (fwd bf16)", z_out, z_ref, atol=5e-2, rtol=5e-2)
    _check("ldj (fwd bf16)", ldj_out, ldj_ref, atol=5e-2, rtol=5e-2)

    print("KERNEL_OK")
</pallas_src>

<mosaic_0001>
module attributes {stable_mosaic.version = 11 : i64} {
  func.func @_coupling_kernel(%arg0: i32, %arg1: memref<8x128xf32, #tpu.memory_space<vmem>>, %arg2: memref<1x128xf32, #tpu.memory_space<vmem>>, %arg3: memref<128x128xf32, #tpu.memory_space<vmem>>, %arg4: memref<1x128xf32, #tpu.memory_space<vmem>>, %arg5: memref<128x128xf32, #tpu.memory_space<vmem>>, %arg6: memref<1x128xf32, #tpu.memory_space<vmem>>, %arg7: memref<128x256xf32, #tpu.memory_space<vmem>>, %arg8: memref<1x256xf32, #tpu.memory_space<vmem>>, %arg9: memref<8x128xf32, #tpu.memory_space<vmem>>, %arg10: memref<8x128xf32, #tpu.memory_space<vmem>>) attributes {dimension_semantics = [#tpu.dimension_semantics<parallel>], iteration_bounds = array<i64: 3>, scalar_prefetch = 0 : i64, scratch_operands = 0 : i64, tpu.core_type = #tpu.core_type<tc>, window_params = [{transform_indices = @transform_0, window_bounds = array<i64: 8, 128>}, {pipeline_mode = #tpu.pipeline_mode<synchronous>, transform_indices = @transform_1, window_bounds = array<i64: 1, 128>}, {pipeline_mode = #tpu.pipeline_mode<synchronous>, transform_indices = @transform_2, window_bounds = array<i64: 128, 128>}, {pipeline_mode = #tpu.pipeline_mode<synchronous>, transform_indices = @transform_3, window_bounds = array<i64: 1, 128>}, {pipeline_mode = #tpu.pipeline_mode<synchronous>, transform_indices = @transform_4, window_bounds = array<i64: 128, 128>}, {pipeline_mode = #tpu.pipeline_mode<synchronous>, transform_indices = @transform_5, window_bounds = array<i64: 1, 128>}, {pipeline_mode = #tpu.pipeline_mode<synchronous>, transform_indices = @transform_6, window_bounds = array<i64: 128, 256>}, {pipeline_mode = #tpu.pipeline_mode<synchronous>, transform_indices = @transform_7, window_bounds = array<i64: 1, 256>}, {transform_indices = @transform_8, window_bounds = array<i64: 8, 128>}, {transform_indices = @transform_9, window_bounds = array<i64: 8, 128>}]} {
    %c0 = arith.constant 0 : index
    %c0_0 = arith.constant 0 : index
    %0 = vector.load %arg1[%c0, %c0_0] : memref<8x128xf32, #tpu.memory_space<vmem>>, vector<8x128xf32>
    %c0_1 = arith.constant 0 : index
    %c0_2 = arith.constant 0 : index
    %1 = vector.load %arg2[%c0_1, %c0_2] : memref<1x128xf32, #tpu.memory_space<vmem>>, vector<1x128xf32>
    %cst = arith.constant 1.000000e+00 : f32
    %2 = vector.broadcast %cst : f32 to vector<1x128xf32>
    %3 = arith.subf %2, %1 : vector<1x128xf32>
    %4 = vector.broadcast %1 : vector<1x128xf32> to vector<8x128xf32>
    %5 = arith.mulf %4, %0 : vector<8x128xf32>
    %c0_3 = arith.constant 0 : index
    %c0_4 = arith.constant 0 : index
    %6 = vector.load %arg3[%c0_3, %c0_4] : memref<128x128xf32, #tpu.memory_space<vmem>>, vector<128x128xf32>
    %cst_5 = arith.constant dense<0.000000e+00> : vector<8x128xf32>
    %7 = tpu.matmul %5, %6, %cst_5 {dimension_numbers = #tpu.dot_dimension_numbers<[1], [0], [0], [1], [0, 0, 1, 1], [], []>} : vector<8x128xf32>, vector<128x128xf32>, vector<8x128xf32> -> vector<8x128xf32>
    %c0_6 = arith.constant 0 : index
    %c0_7 = arith.constant 0 : index
    %8 = vector.load %arg4[%c0_6, %c0_7] : memref<1x128xf32, #tpu.memory_space<vmem>>, vector<1x128xf32>
    %9 = vector.broadcast %8 : vector<1x128xf32> to vector<8x128xf32>
    %10 = arith.addf %7, %9 : vector<8x128xf32>
    %cst_8 = arith.constant 0.000000e+00 : f32
    %11 = vector.broadcast %cst_8 : f32 to vector<8x128xf32>
    %12 = arith.maximumf %10, %11 : vector<8x128xf32>
    %c0_9 = arith.constant 0 : index
    %c0_10 = arith.constant 0 : index
    %13 = vector.load %arg5[%c0_9, %c0_10] : memref<128x128xf32, #tpu.memory_space<vmem>>, vector<128x128xf32>
    %cst_11 = arith.constant dense<0.000000e+00> : vector<8x128xf32>
    %14 = tpu.matmul %12, %13, %cst_11 {dimension_numbers = #tpu.dot_dimension_numbers<[1], [0], [0], [1], [0, 0, 1, 1], [], []>} : vector<8x128xf32>, vector<128x128xf32>, vector<8x128xf32> -> vector<8x128xf32>
    %c0_12 = arith.constant 0 : index
    %c0_13 = arith.constant 0 : index
    %15 = vector.load %arg6[%c0_12, %c0_13] : memref<1x128xf32, #tpu.memory_space<vmem>>, vector<1x128xf32>
    %16 = vector.broadcast %15 : vector<1x128xf32> to vector<8x128xf32>
    %17 = arith.addf %14, %16 : vector<8x128xf32>
    %cst_14 = arith.constant 0.000000e+00 : f32
    %18 = vector.broadcast %cst_14 : f32 to vector<8x128xf32>
    %19 = arith.maximumf %17, %18 : vector<8x128xf32>
    %c0_15 = arith.constant 0 : index
    %c0_16 = arith.constant 0 : index
    %20 = vector.load %arg7[%c0_15, %c0_16] : memref<128x256xf32, #tpu.memory_space<vmem>>, vector<128x256xf32>
    %cst_17 = arith.constant dense<0.000000e+00> : vector<8x256xf32>
    %21 = tpu.matmul %19, %20, %cst_17 {dimension_numbers = #tpu.dot_dimension_numbers<[1], [0], [0], [1], [0, 0, 1, 1], [], []>} : vector<8x128xf32>, vector<128x256xf32>, vector<8x256xf32> -> vector<8x256xf32>
    %c0_18 = arith.constant 0 : index
    %c0_19 = arith.constant 0 : index
    %22 = vector.load %arg8[%c0_18, %c0_19] : memref<1x256xf32, #tpu.memory_space<vmem>>, vector<1x256xf32>
    %23 = vector.broadcast %22 : vector<1x256xf32> to vector<8x256xf32>
    %24 = arith.addf %21, %23 : vector<8x256xf32>
    %25 = vector.extract_strided_slice %24 {offsets = [0, 0], sizes = [8, 128], strides = [1, 1]} : vector<8x256xf32> to vector<8x128xf32>
    %26 = vector.extract_strided_slice %24 {offsets = [0, 128], sizes = [8, 128], strides = [1, 1]} : vector<8x256xf32> to vector<8x128xf32>
    %27 = math.tanh %26 : vector<8x128xf32>
    %28 = math.exp %27 : vector<8x128xf32>
    %29 = arith.mulf %0, %28 : vector<8x128xf32>
    %30 = arith.addf %29, %25 : vector<8x128xf32>
    %31 = vector.broadcast %3 : vector<1x128xf32> to vector<8x128xf32>
    %32 = arith.mulf %31, %30 : vector<8x128xf32>
    %33 = arith.addf %5, %32 : vector<8x128xf32>
    %c0_20 = arith.constant 0 : index
    %c0_21 = arith.constant 0 : index
    %34 = vector.load %arg9[%c0_20, %c0_21] : memref<8x128xf32, #tpu.memory_space<vmem>>, vector<8x128xf32>
    tpu.vector_store %arg9[%c0_20, %c0_21], %33 {strides = array<i32>} : memref<8x128xf32, #tpu.memory_space<vmem>>, vector<8x128xf32>,
    %35 = vector.broadcast %3 : vector<1x128xf32> to vector<8x128xf32>
    %36 = arith.mulf %35, %27 : vector<8x128xf32>
    %cst_22 = arith.constant dense<0.000000e+00> : vector<8xf32>
    %37 = vector.multi_reduction <add>, %36, %cst_22 [1] : vector<8x128xf32> to vector<8xf32>
    %38 = vector.shape_cast %37 : vector<8xf32> to vector<8x1xf32>
    %39 = vector.shape_cast %38 : vector<8x1xf32> to vector<8x1xf32>
    %40 = vector.broadcast %39 : vector<8x1xf32> to vector<8x128xf32>
    %c0_23 = arith.constant 0 : index
    %c0_24 = arith.constant 0 : index
    %41 = vector.load %arg10[%c0_23, %c0_24] : memref<8x128xf32, #tpu.memory_space<vmem>>, vector<8x128xf32>
    tpu.vector_store %arg10[%c0_23, %c0_24], %40 {strides = array<i32>} : memref<8x128xf32, #tpu.memory_space<vmem>>, vector<8x128xf32>,
    return
  }
  func.func @transform_0(%arg0: i32) -> (i32, i32) {
    %c0_i32 = arith.constant 0 : i32
    %c0_i32_0 = arith.constant 0 : i32
    return %arg0, %c0_i32 : i32, i32
  }
  func.func @transform_1(%arg0: i32) -> (i32, i32) {
    %c0_i32 = arith.constant 0 : i32
    %c0_i32_0 = arith.constant 0 : i32
    %c0_i32_1 = arith.constant 0 : i32
    return %c0_i32, %c0_i32_0 : i32, i32
  }
  func.func @transform_2(%arg0: i32) -> (i32, i32) {
    %c0_i32 = arith.constant 0 : i32
    %c0_i32_0 = arith.constant 0 : i32
    %c0_i32_1 = arith.constant 0 : i32
    return %c0_i32, %c0_i32_0 : i32, i32
  }
  func.func @transform_3(%arg0: i32) -> (i32, i32) {
    %c0_i32 = arith.constant 0 : i32
    %c0_i32_0 = arith.constant 0 : i32
    %c0_i32_1 = arith.constant 0 : i32
    return %c0_i32, %c0_i32_0 : i32, i32
  }
  func.func @transform_4(%arg0: i32) -> (i32, i32) {
    %c0_i32 = arith.constant 0 : i32
    %c0_i32_0 = arith.constant 0 : i32
    %c0_i32_1 = arith.constant 0 : i32
    return %c0_i32, %c0_i32_0 : i32, i32
  }
  func.func @transform_5(%arg0: i32) -> (i32, i32) {
    %c0_i32 = arith.constant 0 : i32
    %c0_i32_0 = arith.constant 0 : i32
    %c0_i32_1 = arith.constant 0 : i32
    return %c0_i32, %c0_i32_0 : i32, i32
  }
  func.func @transform_6(%arg0: i32) -> (i32, i32) {
    %c0_i32 = arith.constant 0 : i32
    %c0_i32_0 = arith.constant 0 : i32
    %c0_i32_1 = arith.constant 0 : i32
    return %c0_i32, %c0_i32_0 : i32, i32
  }
  func.func @transform_7(%arg0: i32) -> (i32, i32) {
    %c0_i32 = arith.constant 0 : i32
    %c0_i32_0 = arith.constant 0 : i32
    %c0_i32_1 = arith.constant 0 : i32
    return %c0_i32, %c0_i32_0 : i32, i32
  }
  func.func @transform_8(%arg0: i32) -> (i32, i32) {
    %c0_i32 = arith.constant 0 : i32
    %c0_i32_0 = arith.constant 0 : i32
    return %arg0, %c0_i32 : i32, i32
  }
  func.func @transform_9(%arg0: i32) -> (i32, i32) {
    %c0_i32 = arith.constant 0 : i32
    %c0_i32_0 = arith.constant 0 : i32
    return %arg0, %c0_i32 : i32, i32
  }
}

module attributes {stable_mosaic.version = 11 : i64} {
  func.func @_coupling_kernel(%arg0: i32, %arg1: memref<8x128xf32, #tpu.memory_space<vmem>>, %arg2: memref<1x128xf32, #tpu.memory_space<vmem>>, %arg3: memref<128x128xf32, #tpu.memory_space<vmem>>, %arg4: memref<1x128xf32, #tpu.memory_space<vmem>>, %arg5: memref<128x128xf32, #tpu.memory_space<vmem>>, %arg6: memref<1x128xf32, #tpu.memory_space<vmem>>, %arg7: memref<128x256xf32, #tpu.memory_space<vmem>>, %arg8: memref<1x256xf32, #tpu.memory_space<vmem>>, %arg9: memref<8x128xf32, #tpu.memory_space<vmem>>, %arg10: memref<8x128xf32, #tpu.memory_space<vmem>>) attributes {dimension_semantics = [#tpu.dimension_semantics<parallel>], iteration_bounds = array<i64: 3>, scalar_prefetch = 0 : i64, scratch_operands = 0 : i64, tpu.core_type = #tpu.core_type<tc>, window_params = [{transform_indices = @transform_0, window_bounds = array<i64: 8, 128>}, {pipeline_mode = #tpu.pipeline_mode<synchronous>, transform_indices = @transform_1, window_bounds = array<i64: 1, 128>}, {pipeline_mode = #tpu.pipeline_mode<synchronous>, transform_indices = @transform_2, window_bounds = array<i64: 128, 128>}, {pipeline_mode = #tpu.pipeline_mode<synchronous>, transform_indices = @transform_3, window_bounds = array<i64: 1, 128>}, {pipeline_mode = #tpu.pipeline_mode<synchronous>, transform_indices = @transform_4, window_bounds = array<i64: 128, 128>}, {pipeline_mode = #tpu.pipeline_mode<synchronous>, transform_indices = @transform_5, window_bounds = array<i64: 1, 128>}, {pipeline_mode = #tpu.pipeline_mode<synchronous>, transform_indices = @transform_6, window_bounds = array<i64: 128, 256>}, {pipeline_mode = #tpu.pipeline_mode<synchronous>, transform_indices = @transform_7, window_bounds = array<i64: 1, 256>}, {transform_indices = @transform_8, window_bounds = array<i64: 8, 128>}, {transform_indices = @transform_9, window_bounds = array<i64: 8, 128>}]} {
    %c0 = arith.constant 0 : index
    %c0_0 = arith.constant 0 : index
    %0 = vector.load %arg1[%c0, %c0_0] : memref<8x128xf32, #tpu.memory_space<vmem>>, vector<8x128xf32>
    %c0_1 = arith.constant 0 : index
    %c0_2 = arith.constant 0 : index
    %1 = vector.load %arg2[%c0_1, %c0_2] : memref<1x128xf32, #tpu.memory_space<vmem>>, vector<1x128xf32>
    %cst = arith.constant 1.000000e+00 : f32
    %2 = vector.broadcast %cst : f32 to vector<1x128xf32>
    %3 = arith.subf %2, %1 : vector<1x128xf32>
    %4 = vector.broadcast %1 : vector<1x128xf32> to vector<8x128xf32>
    %5 = arith.mulf %4, %0 : vector<8x128xf32>
    %c0_3 = arith.constant 0 : index
    %c0_4 = arith.constant 0 : index
    %6 = vector.load %arg3[%c0_3, %c0_4] : memref<128x128xf32, #tpu.memory_space<vmem>>, vector<128x128xf32>
    %cst_5 = arith.constant dense<0.000000e+00> : vector<8x128xf32>
    %7 = tpu.matmul %5, %6, %cst_5 {dimension_numbers = #tpu.dot_dimension_numbers<[1], [0], [0], [1], [0, 0, 1, 1], [], []>} : vector<8x128xf32>, vector<128x128xf32>, vector<8x128xf32> -> vector<8x128xf32>
    %c0_6 = arith.constant 0 : index
    %c0_7 = arith.constant 0 : index
    %8 = vector.load %arg4[%c0_6, %c0_7] : memref<1x128xf32, #tpu.memory_space<vmem>>, vector<1x128xf32>
    %9 = vector.broadcast %8 : vector<1x128xf32> to vector<8x128xf32>
    %10 = arith.addf %7, %9 : vector<8x128xf32>
    %cst_8 = arith.constant 0.000000e+00 : f32
    %11 = vector.broadcast %cst_8 : f32 to vector<8x128xf32>
    %12 = arith.maximumf %10, %11 : vector<8x128xf32>
    %c0_9 = arith.constant 0 : index
    %c0_10 = arith.constant 0 : index
    %13 = vector.load %arg5[%c0_9, %c0_10] : memref<128x128xf32, #tpu.memory_space<vmem>>, vector<128x128xf32>
    %cst_11 = arith.constant dense<0.000000e+00> : vector<8x128xf32>
    %14 = tpu.matmul %12, %13, %cst_11 {dimension_numbers = #tpu.dot_dimension_numbers<[1], [0], [0], [1], [0, 0, 1, 1], [], []>} : vector<8x128xf32>, vector<128x128xf32>, vector<8x128xf32> -> vector<8x128xf32>
    %c0_12 = arith.constant 0 : index
    %c0_13 = arith.constant 0 : index
    %15 = vector.load %arg6[%c0_12, %c0_13] : memref<1x128xf32, #tpu.memory_space<vmem>>, vector<1x128xf32>
    %16 = vector.broadcast %15 : vector<1x128xf32> to vector<8x128xf32>
    %17 = arith.addf %14, %16 : vector<8x128xf32>
    %cst_14 = arith.constant 0.000000e+00 : f32
    %18 = vector.broadcast %cst_14 : f32 to vector<8x128xf32>
    %19 = arith.maximumf %17, %18 : vector<8x128xf32>
    %c0_15 = arith.constant 0 : index
    %c0_16 = arith.constant 0 : index
    %20 = vector.load %arg7[%c0_15, %c0_16] : memref<128x256xf32, #tpu.memory_space<vmem>>, vector<128x256xf32>
    %cst_17 = arith.constant dense<0.000000e+00> : vector<8x256xf32>
    %21 = tpu.matmul %19, %20, %cst_17 {dimension_numbers = #tpu.dot_dimension_numbers<[1], [0], [0], [1], [0, 0, 1, 1], [], []>} : vector<8x128xf32>, vector<128x256xf32>, vector<8x256xf32> -> vector<8x256xf32>
    %c0_18 = arith.constant 0 : index
    %c0_19 = arith.constant 0 : index
    %22 = vector.load %arg8[%c0_18, %c0_19] : memref<1x256xf32, #tpu.memory_space<vmem>>, vector<1x256xf32>
    %23 = vector.broadcast %22 : vector<1x256xf32> to vector<8x256xf32>
    %24 = arith.addf %21, %23 : vector<8x256xf32>
    %25 = vector.extract_strided_slice %24 {offsets = [0, 0], sizes = [8, 128], strides = [1, 1]} : vector<8x256xf32> to vector<8x128xf32>
    %26 = vector.extract_strided_slice %24 {offsets = [0, 128], sizes = [8, 128], strides = [1, 1]} : vector<8x256xf32> to vector<8x128xf32>
    %27 = math.tanh %26 : vector<8x128xf32>
    %28 = math.exp %27 : vector<8x128xf32>
    %29 = arith.mulf %0, %28 : vector<8x128xf32>
    %30 = arith.addf %29, %25 : vector<8x128xf32>
    %31 = vector.broadcast %3 : vector<1x128xf32> to vector<8x128xf32>
    %32 = arith.mulf %31, %30 : vector<8x128xf32>
    %33 = arith.addf %5, %32 : vector<8x128xf32>
    %c0_20 = arith.constant 0 : index
    %c0_21 = arith.constant 0 : index
    %34 = vector.load %arg9[%c0_20, %c0_21] : memref<8x128xf32, #tpu.memory_space<vmem>>, vector<8x128xf32>
    tpu.vector_store %arg9[%c0_20, %c0_21], %33 {strides = array<i32>} : memref<8x128xf32, #tpu.memory_space<vmem>>, vector<8x128xf32>,
    %35 = vector.broadcast %3 : vector<1x128xf32> to vector<8x128xf32>
    %36 = arith.mulf %35, %27 : vector<8x128xf32>
    %cst_22 = arith.constant dense<0.000000e+00> : vector<8xf32>
    %37 = vector.multi_reduction <add>, %36, %cst_22 [1] : vector<8x128xf32> to vector<8xf32>
    %38 = vector.shape_cast %37 : vector<8xf32> to vector<8x1xf32>
    %39 = vector.shape_cast %38 : vector<8x1xf32> to vector<8x1xf32>
    %40 = vector.broadcast %39 : vector<8x1xf32> to vector<8x128xf32>
    %c0_23 = arith.constant 0 : index
    %c0_24 = arith.constant 0 : index
    %41 = vector.load %arg10[%c0_23, %c0_24] : memref<8x128xf32, #tpu.memory_space<vmem>>, vector<8x128xf32>
    tpu.vector_store %arg10[%c0_23, %c0_24], %40 {strides = array<i32>} : memref<8x128xf32, #tpu.memory_space<vmem>>, vector<8x128xf32>,
    return
  }
  func.func @transform_0(%arg0: i32) -> (i32, i32) {
    %c0_i32 = arith.constant 0 : i32
    %c0_i32_0 = arith.constant 0 : i32
    return %arg0, %c0_i32 : i32, i32
  }
  func.func @transform_1(%arg0: i32) -> (i32, i32) {
    %c0_i32 = arith.constant 0 : i32
    %c0_i32_0 = arith.constant 0 : i32
    %c0_i32_1 = arith.constant 0 : i32
    return %c0_i32, %c0_i32_0 : i32, i32
  }
  func.func @transform_2(%arg0: i32) -> (i32, i32) {
    %c0_i32 = arith.constant 0 : i32
    %c0_i32_0 = arith.constant 0 : i32
    %c0_i32_1 = arith.constant 0 : i32
    return %c0_i32, %c0_i32_0 : i32, i32
  }
  func.func @transform_3(%arg0: i32) -> (i32, i32) {
    %c0_i32 = arith.constant 0 : i32
    %c0_i32_0 = arith.constant 0 : i32
    %c0_i32_1 = arith.constant 0 : i32
    return %c0_i32, %c0_i32_0 : i32, i32
  }
  func.func @transform_4(%arg0: i32) -> (i32, i32) {
    %c0_i32 = arith.constant 0 : i32
    %c0_i32_0 = arith.constant 0 : i32
    %c0_i32_1 = arith.constant 0 : i32
    return %c0_i32, %c0_i32_0 : i32, i32
  }
  func.func @transform_5(%arg0: i32) -> (i32, i32) {
    %c0_i32 = arith.constant 0 : i32
    %c0_i32_0 = arith.constant 0 : i32
    %c0_i32_1 = arith.constant 0 : i32
    return %c0_i32, %c0_i32_0 : i32, i32
  }
  func.func @transform_6(%arg0: i32) -> (i32, i32) {
    %c0_i32 = arith.constant 0 : i32
    %c0_i32_0 = arith.constant 0 : i32
    %c0_i32_1 = arith.constant 0 : i32
    return %c0_i32, %c0_i32_0 : i32, i32
  }
  func.func @transform_7(%arg0: i32) -> (i32, i32) {
    %c0_i32 = arith.constant 0 : i32
    %c0_i32_0 = arith.constant 0 : i32
    %c0_i32_1 = arith.constant 0 : i32
    return %c0_i32, %c0_i32_0 : i32, i32
  }
  func.func @transform_8(%arg0: i32) -> (i32, i32) {
    %c0_i32 = arith.constant 0 : i32
    %c0_i32_0 = arith.constant 0 : i32
    return %arg0, %c0_i32 : i32, i32
  }
  func.func @transform_9(%arg0: i32) -> (i32, i32) {
    %c0_i32 = arith.constant 0 : i32
    %c0_i32_0 = arith.constant 0 : i32
    return %arg0, %c0_i32 : i32, i32
  }
}

</mosaic_0001>

<bundles_post_ra>
// kernel: tpu_custom_call.1
= control target key start
LH: loop header
LB: loop body
LE: loop exit
PB: predicated region body
PF: predicated region fallthrough
CT: control target
= control target key end

     0   :  { %s1432_s0 = inlined_call_operand.hbm [shape: f32[24,128], index: 0, kind: input, shape index: {}]   ;;  %s1433_s1 = inlined_call_operand.hbm [shape: f32[1,128], index: 1, kind: input, shape index: {}]   ;;  %s1434_s2 = inlined_call_operand.hbm [shape: f32[128,128], index: 2, kind: input, shape index: {}]   ;;  %s1435_s3 = inlined_call_operand.vmem [shape: f32[1,128], index: 3, kind: input, shape index: {}]   ;;  %s1436_s4 = inlined_call_operand.hbm [shape: f32[128,128], index: 4, kind: input, shape index: {}]   ;;  %s1437_s5 = inlined_call_operand.vmem [shape: f32[1,128], index: 5, kind: input, shape index: {}]   ;;  %s1438_s6 = inlined_call_operand.hbm [shape: f32[128,256], index: 6, kind: input, shape index: {}]   ;;  %s1439_s7 = inlined_call_operand.vmem [shape: f32[1,256], index: 7, kind: input, shape index: {}]   ;;  %s1440_s8 = inlined_call_operand.hbm [shape: f32[24,128], index: 8, kind: output, shape index: {0}]   ;;  %s1441_s9 = inlined_call_operand.hbm [shape: f32[24,128], index: 9, kind: output, shape index: {1}]  }
   0x1   :  { %1442 = sst [smem:[#allocation19_spill]] %s1433_s1 }
   0x2   :  { %1443 = sst [smem:[#allocation20_spill]] %s1434_s2 }
   0x3   :  { %1444 = sst [smem:[#allocation21_spill]] %s1436_s4 }
   0x4   :  { %1445 = sst [smem:[#allocation22_spill]] %s1438_s6 }
   0x5   :  { %15 = vsyncpa [#allocation3], 0 }
   0x6   :  { %17 = vsyncpa [#allocation3 + $0x1], 0 }
   0x7   :  { %18 = vsyncpa [#allocation6], 0 }
   0x8   :  { %19 = vsyncpa [#allocation9], 0 }
   0x9   :  { %20 = vsyncpa [#allocation4], 0 }
   0xa   :  { %22 = vsyncpa [#allocation4 + $0x1], 0 }
   0xb   :  { %23 = vsyncpa [#allocation13], 0 }
   0xc   :  { %25 = vsyncpa [#allocation13 + $0x1], 0  ;;  %s1225_s30 = smov 0   ;;  %s1227_s10 = smov 0  }
   0xd   :  { %s1229_s11 = smov 0   ;;  %s1231_s12 = smov 0  }
   0xe LB: > { %s1446_s1 = sld [smem:[#allocation19_spill]]  ;;  %s1249_s16 = sadd.s32 4294967295, %s1165_s12   ;;  %s1165_s12 = sphi %s1231_s12, %s1460_s12   ;;  %s1161_s11 = sphi %s1229_s11, %s1459_s11   ;;  %s1157_s10 = sphi %s1227_s10, %s1458_s10   ;;  %s1153_s30 = sphi %s1225_s30, %s1457_s30  }
   0xf   : > { %p784_p0 = scmp.ge.s32.totalorder %s1165_s12, 1  ;;  %p52_p1 = scmp.eq.s32.totalorder %s1249_s16, 0 }
  0x10   : > { %p261_p2 = scmp.lt.s32.totalorder %s1165_s12, 4  ;;  %s1167_s18 = smov [#allocation5]  }
  0x11   : > { %s275_s19 = sshll.u32 %s1167_s18, 4  ;;  %s1448_s4 = sld [smem:[#allocation21_spill]]  ;;  %s276_s19 = int_to_ptr.vmem [resolvable:$true] %s275_s19 }
  0x12   : > { %p1254_p3 = pnand %p784_p0, %p261_p2  ;;  %s1450_s2 = sld [smem:[#allocation20_spill]] }
  0x13   : > { %s1168_s27 = smov [#allocation8]   ;;  %s1169_s29 = smov 128  }
  0x14   : > { %s273_s15 = sshll.u32 %s1446_s1, 4  ;;  %p828_p4 = pneg %p1254_p3  ;;  %s274_s15 = int_to_ptr.hbm [resolvable:$true] %s273_s15 }
  0x15   : > { %s303_s28 = sshll.u32 %s1168_s27, 4  ;;  %s1170_s13 = smov 8   ;;  %s304_s28 = int_to_ptr.vmem [resolvable:$true] %s303_s28 }
  0x16   : > { %p1265_p5 = pnand %p828_p4, %p52_p1  ;;  %s1451_s6 = sld [smem:[#allocation22_spill]] }
  0x17   : > { %s301_s22 = sshll.u32 %s1448_s4, 4  ;;  %s1171_s21 = smov [#allocation7]   ;;  %s302_s22 = int_to_ptr.hbm [resolvable:$true] %s301_s22 }
  0x18   : > { %s284_s26 = sshll.u32 %s1450_s2, 4  ;;  %s286_s24 = sshll.u32 %s1171_s21, 4  ;;  %s285_s26 = int_to_ptr.hbm [resolvable:$true] %s284_s26  ;;  %s287_s24 = int_to_ptr.vmem [resolvable:$true] %s286_s24 }
  0x19   : > { %831 = dma.hbm_to_vmem [thread:$0]  (!%p1265_p5), %s274_s15, 16, %s276_s19, [#allocation6]  }
  0x1a   : > { %837 = dma.hbm_to_vmem [thread:$0]  (!%p1265_p5), %s302_s22, 2048, %s304_s28, [#allocation9], %s1169_s29, %s1169_s29, %s1170_s13  }
  0x1b   : > { %834 = dma.hbm_to_vmem [thread:$0]  (!%p1265_p5), %s285_s26, 2048, %s287_s24, [#allocation6], %s1169_s29, %s1169_s29, %s1170_s13  }
  0x1c   : > { %s318_s20 = sshll.u32 %s1451_s6, 4  ;;  %s1172_s15 = smov [#allocation10]   ;;  %s319_s20 = int_to_ptr.hbm [resolvable:$true] %s318_s20 }
  0x1d   : > { %s320_s19 = sshll.u32 %s1172_s15, 4  ;;  %s1173_s22 = smov 256   ;;  %s321_s19 = int_to_ptr.vmem [resolvable:$true] %s320_s19 }
  0x1e   : > { %s1174_s25 = smov 16   ;;  %s783_s27 = sadd.s32 4294967294, %s1165_s12  }
  0x1f   : > { %840 = dma.hbm_to_vmem [thread:$0]  (!%p1265_p5), %s319_s20, 4096, %s321_s19, [#allocation9], %s1173_s22, %s1173_s22, %s1174_s25  }
  0x20   : > { %s1285_s28 = sadd.s32 1, %s1165_s12   ;;  %s38_s18 = sadd.s32 1, %s1161_s11 }
  0x21   : > { %s35_s14 = ssub.s32 %s1165_s12, %s1285_s28  ;;  %p45_p7 = scmp.ne.s32.totalorder %s1161_s11, %s1157_s10 }
  0x22   : > { %p36_p6 = scmp.eq.s32.totalorder %s35_s14, 0  ;;  %p46_p8 = scmp.eq.s32.totalorder %s1165_s12, 0 }
  0x23   : > { %p51_p9 = scmp.ne.s32.totalorder %s1157_s10, %s1153_s30  ;;  %p222_p12 = scmp.eq.s32.totalorder %s1249_s16, 2 }
  0x24   : > { %s1296_s26 = scalar_select %p36_p6, %s1161_s11, %s38_s18  }
  0x25   : > { %p1298_p10 = por %p46_p8, %p45_p7  ;;  %p1304_p11 = por %p52_p1, %p51_p9 }
  0x26   : > { %p228_p13 = scmp.eq.s32.totalorder %s783_s27, 2  ;;  %p856_p0 = scmp.lt.s32.totalorder %s1165_s12, 3 }
  0x27   : > { %s337_s13 = sand.u32 1, %s1161_s11   ;;  %p1311_p2 = por %p222_p12, %p45_p7 }
  0x28   : > { %p1315_p4 = por %p228_p13, %p51_p9  ;;  %s790_s24 = sshll.u32 %s337_s13, 3 }
  0x29   : > { %s791_s15 = sshll.u32 %s1165_s12, 3  ;;  %s341_s14 = scalar_lea.vmem [#allocation2], %s790_s24 }
  0x2a   : > { %s345_s25 = scalar_lea.hbm %s1432_s0, %s791_s15  ;;  %s349_s18 = sshll.u32 %s341_s14, 4  ;;  %s350_s18 = int_to_ptr.vmem [resolvable:$true] %s349_s18 }
  0x2b   : > { %s347_s1 = sshll.u32 %s345_s25, 4  ;;  %p1325_p5 = pnand %p856_p0, %p1298_p10  ;;  %s348_s1 = int_to_ptr.hbm [resolvable:$true] %s347_s1 }
  0x2c   : > { %s338_s2 = scalar_lea.sflag [#allocation3], %s337_s13  ;;  %s1029_s4 = sshra.s32 %s348_s1, 4  ;;  %s1030_s4 = int_to_ptr.hbm [resolvable:$true] %s1029_s4 }
  0x2d   : > { %s1031_s6 = scalar_lea.hbm %s1030_s4, 8  ;;  %p1033_p7 = pneg %p1325_p5 }
  0x2e   : > { %p1032_p6 = scmp.ne.s32.totalorder %s1030_s4, %s1031_s6  ;;  %s1036_s19 = scalar_lea.hbm %s1432_s0, 24 }
  0x2f   : > { %p1037_p10 = scmp.lt.s32.totalorder %s1030_s4, %s1432_s0  ;;  %p1038_p12 = scmp.lt.s32.totalorder %s1036_s19, %s1031_s6 }
  0x30   : > { %p1034_p8 = pnand %p1033_p7, %p1032_p6 }
  0x31   : > { %p1039_p13 = por %p1038_p12, %p1037_p10 }
  0x32   : > { %p1035_p9 = pneg %p1034_p8 }
  0x34   : > { %p1040_p0 = pnand %p1039_p13, %p1035_p9 }
  0x36   : > { %1043 = shalt.err (!%p1040_p0)
}
  0x37   : > { %844 = dma.hbm_to_vmem [thread:$0]  (!%p1325_p5), %s348_s1, 128, %s350_s18, %s338_s2  }
  0x38   : > { %358 = sbr.rel (%p1254_p3) target bundleno = 620 (0x26c), region = 52  ;;  %s1342_s13 = sand.u32 (!%p1254_p3), 1, %s1157_s10  }
  0x39   : > { %s1345_s25 = sshll.u32 (!%p1254_p3), %s1342_s13, 3  ;;  %s361_s4 = scalar_lea.sflag (!%p1254_p3), [#allocation3], %s1342_s13 }
  0x3a   : > { %s364_s6 = scalar_lea.vmem (!%p1254_p3), [#allocation2], %s1345_s25 }
  0x3d   : > { %1132 = dma.done.wait (%p1304_p11), %s361_s4, 128  }
  0x3e   : > { %1134 = vsyncadd (%p1304_p11), %s361_s4, 4294967168 }
  0x3f   : > { %1136 = dma.done.wait (%p52_p1), [#allocation6], 2064  }
  0x40   : > { %1138 = vsyncadd (%p52_p1), [#allocation6], 4294965232 }
  0x41   : > { %1140 = dma.done.wait (%p52_p1), [#allocation9], 6144  }
  0x42   : > { %1142 = vsyncadd (%p52_p1), [#allocation9], 4294961152  ;;  %v447_v0 = vld [vmem:[#allocation7 + $0x78] sm:$0xff]  ;;  %v446_v1 = vld [vmem:[#allocation7 + $0x70] sm:$0xff]  ;;  %s802_s27 = sshll.u32 %s1249_s16, 3  ;;  %s417_s22 = scalar_lea.vmem [#allocation11], %s1345_s25 }
  0x43   : > { %452 = vmatpush.msra.mxu0 %v447_v0  ;;  %v445_v2 = vld [vmem:[#allocation7 + $0x68] sm:$0xff]  ;;  %v444_v3 = vld [vmem:[#allocation7 + $0x60] sm:$0xff]  ;;  %v443_v4 = vld [vmem:[#allocation7 + $0x58] sm:$0xff]  ;;  %s623_s19 = scalar_lea.hbm %s1440_s8, %s802_s27  ;;  %s625_s29 = sshll.u32 %s417_s22, 4  ;;  %s626_s29 = int_to_ptr.vmem [resolvable:$true] %s625_s29 }
  0x44   : > { %v488_v5 = vld [vmem:[#allocation8 + $0x78] sm:$0xff]  ;;  %v487_v6 = vld [vmem:[#allocation8 + $0x70] sm:$0xff]  ;;  %v486_v8 = vld [vmem:[#allocation8 + $0x68] sm:$0xff]  ;;  %s627_s4 = sshll.u32 %s623_s19, 4  ;;  %s1079_s14 = scalar_lea.hbm %s1440_s8, 24  ;;  %s628_s4 = int_to_ptr.hbm [resolvable:$true] %s627_s4 }
  0x45   : > { %453 = vmatpush.msra.mxu0 %v446_v1  ;;  %493 = vmatpush.msra.mxu1 %v488_v5  ;;  %v442_v7 = vld [vmem:[#allocation7 + $0x50] sm:$0xff]  ;;  %v441_v9 = vld [vmem:[#allocation7 + $0x48] sm:$0xff]  ;;  %v485_v10 = vld [vmem:[#allocation8 + $0x60] sm:$0xff]  ;;  %s1073_s1 = sshra.s32 %s628_s4, 4  ;;  %s1074_s1 = int_to_ptr.hbm [resolvable:$true] %s1073_s1 }
  0x46   : > { %v440_v11 = vld [vmem:[#allocation7 + $0x40] sm:$0xff]  ;;  %v484_v12 = vld [vmem:[#allocation8 + $0x58] sm:$0xff]  ;;  %v483_v14 = vld [vmem:[#allocation8 + $0x50] sm:$0xff]  ;;  %s1075_s2 = scalar_lea.hbm %s1074_s1, 8  ;;  %p1080_p5 = scmp.lt.s32.totalorder %s1074_s1, %s1440_s8 }
  0x47   : > { %454 = vmatpush.msra.mxu0 %v445_v2  ;;  %494 = vmatpush.msra.mxu1 %v487_v6  ;;  %v439_v13 = vld [vmem:[#allocation7 + $0x38] sm:$0xff]  ;;  %v438_v15 = vld [vmem:[#allocation7 + $0x30] sm:$0xff]  ;;  %v482_v16 = vld [vmem:[#allocation8 + $0x48] sm:$0xff]  ;;  %p1076_p1 = scmp.ne.s32.totalorder %s1074_s1, %s1075_s2  ;;  %p1081_p6 = scmp.lt.s32.totalorder %s1079_s14, %s1075_s2 }
  0x48   : > { %v437_v17 = vld [vmem:[#allocation7 + $0x28] sm:$0xff]  ;;  %v481_v18 = vld [vmem:[#allocation8 + $0x40] sm:$0xff]  ;;  %v480_v20 = vld [vmem:[#allocation8 + $0x38] sm:$0xff] }
  0x49   : > { %455 = vmatpush.msra.mxu0 %v444_v3  ;;  %495 = vmatpush.msra.mxu1 %v486_v8  ;;  %v436_v19 = vld [vmem:[#allocation7 + $0x20] sm:$0xff]  ;;  %v435_v21 = vld [vmem:[#allocation7 + $0x18] sm:$0xff]  ;;  %v479_v22 = vld [vmem:[#allocation8 + $0x30] sm:$0xff]  ;;  %p1077_p3 = pnand %p1076_p1, %p1311_p2  ;;  %p1082_p7 = por %p1081_p6, %p1080_p5 }
  0x4a   : > { %v434_v23 = vld [vmem:[#allocation7 + $0x10] sm:$0xff]  ;;  %v902_v24 = vld [vmem:[#allocation5] ss:$0 sm:$0xff]  ;;  %v478_v25 = vld [vmem:[#allocation8 + $0x28] sm:$0xff] }
  0x4b   : > { %456 = vmatpush.msra.mxu0 %v443_v4  ;;  %496 = vmatpush.msra.mxu1 %v485_v10  ;;  %v1363_v26 = vld [vmem:[%s364_s6] sm:$0xff]  ;;  %v477_v28 = vld [vmem:[#allocation8 + $0x20] sm:$0xff]  ;;  %s608_s6 = scalar_lea.sflag [#allocation4], %s1342_s13  ;;  %p1078_p11 = pneg %p1077_p3 }
  0x4c   : > { %v433_v27 = vld [vmem:[#allocation7 + $0x8] sm:$0xff]  ;;  %v432_v29 = vld [vmem:[#allocation7] sm:$0xff]  ;;  %v1366_v30 = vmul.f32 %v902_v24, %v1363_v26  ;;  %v476_v31 = vld [vmem:[#allocation8 + $0x18] sm:$0xff] }
  0x4d   : > { %457 = vmatpush.msra.mxu0 %v442_v7  ;;  %497 = vmatpush.msra.mxu1 %v484_v12  ;;  %v475_v32 = vld [vmem:[#allocation8 + $0x10] sm:$0xff]  ;;  %v474_v33 = vld [vmem:[#allocation8 + $0x8] sm:$0xff]  ;;  %v473_v34 = vld [vmem:[#allocation8] sm:$0xff]  ;;  %p1083_p8 = pnand %p1082_p7, %p1078_p11 }
  0x4e   : > { %v544_v35 = vld [vmem:[#allocation10 + $0xf0] sm:$0xff]  ;;  %v545_v36 = vld [vmem:[#allocation10 + $0xf8] sm:$0xff]  ;;  %v542_v37 = vld [vmem:[#allocation10 + $0xe0] sm:$0xff] }
  0x4f   : > { %458 = vmatpush.msra.mxu0 %v441_v9  ;;  %498 = vmatpush.msra.mxu1 %v483_v14  ;;  %v543_v38 = vld [vmem:[#allocation10 + $0xe8] sm:$0xff]  ;;  %v540_v39 = vld [vmem:[#allocation10 + $0xd0] sm:$0xff]  ;;  %v541_v40 = vld [vmem:[#allocation10 + $0xd8] sm:$0xff] }
  0x50   : > { %552 = vmatpush.msra.mxu2 %v544_v35  ;;  %572 = vmatpush.msra.mxu3 %v545_v36  ;;  %v538_v41 = vld [vmem:[#allocation10 + $0xc0] sm:$0xff]  ;;  %v539_v42 = vld [vmem:[#allocation10 + $0xc8] sm:$0xff]  ;;  %v536_v43 = vld [vmem:[#allocation10 + $0xb0] sm:$0xff] }
  0x51   : > { %459 = vmatpush.msra.mxu0 %v440_v11  ;;  %499 = vmatpush.msra.mxu1 %v482_v16  ;;  %v537_v44 = vld [vmem:[#allocation10 + $0xb8] sm:$0xff]  ;;  %v534_v45 = vld [vmem:[#allocation10 + $0xa0] sm:$0xff]  ;;  %v535_v46 = vld [vmem:[#allocation10 + $0xa8] sm:$0xff] }
  0x52   : > { %553 = vmatpush.msra.mxu2 %v542_v37  ;;  %573 = vmatpush.msra.mxu3 %v543_v38  ;;  %v532_v47 = vld [vmem:[#allocation10 + $0x90] sm:$0xff]  ;;  %v533_v48 = vld [vmem:[#allocation10 + $0x98] sm:$0xff]  ;;  %v530_v49 = vld [vmem:[#allocation10 + $0x80] sm:$0xff] }
  0x53   : > { %460 = vmatpush.msra.mxu0 %v439_v13  ;;  %500 = vmatpush.msra.mxu1 %v481_v18  ;;  %v531_v50 = vld [vmem:[#allocation10 + $0x88] sm:$0xff]  ;;  %v528_v51 = vld [vmem:[#allocation10 + $0x70] sm:$0xff]  ;;  %v529_v52 = vld [vmem:[#allocation10 + $0x78] sm:$0xff] }
  0x54   : > { %554 = vmatpush.msra.mxu2 %v540_v39  ;;  %574 = vmatpush.msra.mxu3 %v541_v40  ;;  %v526_v53 = vld [vmem:[#allocation10 + $0x60] sm:$0xff]  ;;  %v527_v54 = vld [vmem:[#allocation10 + $0x68] sm:$0xff]  ;;  %v524_v55 = vld [vmem:[#allocation10 + $0x50] sm:$0xff] }
  0x55   : > { %461 = vmatpush.msra.mxu0 %v438_v15  ;;  %501 = vmatpush.msra.mxu1 %v480_v20  ;;  %v525_v56 = vld [vmem:[#allocation10 + $0x58] sm:$0xff]  ;;  %v522_v57 = vld [vmem:[#allocation10 + $0x40] sm:$0xff]  ;;  %v523_v58 = vld [vmem:[#allocation10 + $0x48] sm:$0xff] }
  0x56   : > { %555 = vmatpush.msra.mxu2 %v538_v41  ;;  %575 = vmatpush.msra.mxu3 %v539_v42  ;;  %v520_v59 = vld [vmem:[#allocation10 + $0x30] sm:$0xff]  ;;  %v521_v60 = vld [vmem:[#allocation10 + $0x38] sm:$0xff]  ;;  %v903_v61 = vld [vmem:[%s1435_s3] ss:$0 sm:$0xff] }
  0x57   : > { %462 = vmatpush.msra.mxu0 %v437_v17  ;;  %502 = vmatpush.msra.mxu1 %v479_v22  ;;  %v518_v1 = vld [vmem:[#allocation10 + $0x20] sm:$0xff]  ;;  %v519_v2 = vld [vmem:[#allocation10 + $0x28] sm:$0xff]  ;;  %v516_v3 = vld [vmem:[#allocation10 + $0x10] sm:$0xff] }
  0x58   : > { %556 = vmatpush.msra.mxu2 %v536_v43  ;;  %576 = vmatpush.msra.mxu3 %v537_v44  ;;  %v517_v4 = vld [vmem:[#allocation10 + $0x18] sm:$0xff]  ;;  %v514_v5 = vld [vmem:[#allocation10] sm:$0xff]  ;;  %v515_v6 = vld [vmem:[#allocation10 + $0x8] sm:$0xff] }
  0x59   : > { %463 = vmatpush.msra.mxu0 %v436_v19  ;;  %503 = vmatpush.msra.mxu1 %v478_v25  ;;  %v904_v7 = vld [vmem:[%s1437_s5] ss:$0 sm:$0xff]  ;;  %v426_v13 = vld [vmem:[#allocation5] sm:$0x1] }
  0x5a   : > { %557 = vmatpush.msra.mxu2 %v534_v45  ;;  %577 = vmatpush.msra.mxu3 %v535_v46  ;;  %v546_v11 = vld [vmem:[%s1439_s7] sm:$0x3]  ;;  %v427_v16 = vsub.f32 1.0, %v426_v13 }
  0x5b   : > { %464 = vmatpush.msra.mxu0 %v435_v21  ;;  %504 = vmatpush.msra.mxu1 %v477_v28  ;;  %v549_v12 = vperm.slane %v546_v11, 1  ;;  %v548_v21 = vperm.slane %v546_v11, 0 }
  0x5c   : > { %558 = vmatpush.msra.mxu2 %v532_v47  ;;  %578 = vmatpush.msra.mxu3 %v533_v48  ;;  %v598_v17 = vperm.slane %v427_v16, 0 }
  0x5d   : > { %465 = vmatpush.msra.mxu0 %v434_v23  ;;  %505 = vmatpush.msra.mxu1 %v476_v31 }
  0x5e   : > { %559 = vmatpush.msra.mxu2 %v530_v49  ;;  %579 = vmatpush.msra.mxu3 %v531_v50 }
  0x5f   : > { %466 = vmatpush.msra.mxu0 %v433_v27  ;;  %506 = vmatpush.msra.mxu1 %v475_v32 }
  0x60   : > { %560 = vmatpush.msra.mxu2 %v528_v51  ;;  %580 = vmatpush.msra.mxu3 %v529_v52 }
  0x61   : > { %467 = vmatpush.msra.mxu0 %v432_v29  ;;  %507 = vmatpush.msra.mxu1 %v474_v33 }
  0x62   : > { %468 = vmatmul.f32.vlgmr.msra.gmra.mxu0 %v1366_v30  ;;  %561 = vmatpush.msra.mxu2 %v526_v53 }
  0x63   : > { %508 = vmatpush.msra.mxu1 %v473_v34  ;;  %581 = vmatpush.msra.mxu3 %v527_v54 }
  0x64   : > { %562 = vmatpush.msra.mxu2 %v524_v55 }
  0x65   : > { %582 = vmatpush.msra.mxu3 %v525_v56 }
  0x66   : > { %563 = vmatpush.msra.mxu2 %v522_v57 }
  0x67   : > { %583 = vmatpush.msra.mxu3 %v523_v58 }
  0x68   : > { %564 = vmatpush.msra.mxu2 %v520_v59 }
  0x69   : > { %584 = vmatpush.msra.mxu3 %v521_v60 }
  0x6a   : > { %565 = vmatpush.msra.mxu2 %v518_v1 }
  0x6b   : > { %585 = vmatpush.msra.mxu3 %v519_v2 }
  0x6c   : > { %566 = vmatpush.msra.mxu2 %v516_v3 }
  0x6d   : > { %586 = vmatpush.msra.mxu3 %v517_v4 }
  0x6e   : > { %567 = vmatpush.msra.mxu2 %v514_v5 }
  0x6f   : > { %587 = vmatpush.msra.mxu3 %v515_v6 }
  0xdf   : > { %v469_v62 = vpop.f32.mrf.mxu0 }
  0xe0   : > { %v470_v63 = vadd.f32 %v903_v61, %v469_v62 }
  0xe2   : > { %v472_v0 = vmax.f32 %v470_v63, 0.0 }
  0xe4   : > { %509 = vmatmul.f32.vlgmr.msra.gmra.mxu1 %v472_v0 }
 0x161   : > { %v510_v8 = vpop.f32.mrf.mxu1 }
 0x162   : > { %v511_v9 = vadd.f32 %v904_v7, %v510_v8 }
 0x164   : > { %v513_v10 = vmax.f32 %v511_v9, 0.0 }
 0x166   : > { %568 = vmatmul.f32.vlgmr.msra.gmra.mxu2 %v513_v10  ;;  %588 = vmatmul.f32.vlgmr.msra.gmra.mxu3 %v513_v10 }
 0x1e9   : > { %v589_v14 = vpop.f32.mrf.mxu3  ;;  %v569_v22 = vpop.f32.mrf.mxu2 }
 0x1ea   : > { %v590_v15 = vadd.f32 %v589_v14, %v549_v12  ;;  %v570_v24 = vadd.f32 %v569_v22, %v548_v21 }
 0x1ec   : > { %905 = vtanh.f32 %v590_v15 }
 0x1f2   : > { %v906_v18 = vpop.eup %905 }
 0x1f3   : > { %v593_v19 = vmul.f32 1.442695, %v906_v18  ;;  %v603_v20 = vmul.f32 %v906_v18, %v598_v17 }
 0x1f5   : > { %907 = vpow2.f32 %v593_v19  ;;  %604 = vadd.xlane.f32.xlu0 %v603_v20 }
 0x1fb   : > { %v908_v23 = vpop.eup %907 }
 0x1fc   : > { %v595_v25 = vmul.f32 %v908_v23, %v1363_v26 }
 0x1fe   : > { %v596_v27 = vadd.f32 %v595_v25, %v570_v24 }
 0x200   : > { %v600_v28 = vmul.f32 %v598_v17, %v596_v27 }
 0x202   : > { %v601_v29 = vadd.f32 %v600_v28, %v1366_v30 }
 0x204   : > { %602 = vst [vmem:[%s417_s22] sm:$0xff] %v601_v29 }
 0x205   : > { %1086 = shalt.err (!%p1083_p8)
}
 0x206   : > { %824 = dma.vmem_to_hbm [thread:$0]  (%p1311_p2), %s626_s29, 128, %s628_s4, %s608_s6  }
 0x207   : > { %s637_s22 = scalar_lea.hbm %s1441_s9, %s802_s27  ;;  %s424_s17 = scalar_lea.vmem [#allocation12], %s1345_s25 }
 0x208   : > { %s639_s23 = sshll.u32 %s424_s17, 4  ;;  %s641_s18 = sshll.u32 %s637_s22, 4  ;;  %s640_s23 = int_to_ptr.vmem [resolvable:$true] %s639_s23  ;;  %s642_s18 = int_to_ptr.hbm [resolvable:$true] %s641_s18 }
 0x209   : > { %s613_s1 = scalar_lea.sflag [#allocation13], %s1342_s13  ;;  %s1101_s2 = sshra.s32 %s642_s18, 4  ;;  %s1102_s2 = int_to_ptr.hbm [resolvable:$true] %s1101_s2 }
 0x20a   : > { %s1103_s14 = scalar_lea.hbm %s1102_s2, 8  ;;  %s1107_s4 = scalar_lea.hbm %s1441_s9, 24 }
 0x20b   : > { %p1104_p9 = scmp.ne.s32.totalorder %s1102_s2, %s1103_s14  ;;  %p1108_p13 = scmp.lt.s32.totalorder %s1102_s2, %s1441_s9 }
 0x20c   : > { %p1109_p0 = scmp.lt.s32.totalorder %s1107_s4, %s1103_s14 }
 0x20d   : > { %p1105_p10 = pnand %p1104_p9, %p1311_p2 }
 0x20e   : > { %p1110_p1 = por %p1109_p0, %p1108_p13 }
 0x20f   : > { %p1106_p12 = pneg %p1105_p10 }
 0x211   : > { %p1111_p3 = pnand %p1110_p1, %p1106_p12 }
 0x268   : > { %v605_v26 = vpop.xlane.xlu0 %604 }
 0x269   : > { %606 = vst [vmem:[%s424_s17] sm:$0xff] %v605_v26 }
 0x26a   : > { %1114 = shalt.err (!%p1111_p3)
}
 0x26b   : > { %825 = dma.vmem_to_hbm [thread:$0]  (%p1311_p2), %s640_s23, 128, %s642_s18, %s613_s1  }
 0x26c PF: > { %p861_p11 = scmp.ge.s32.totalorder %s1165_s12, 2  ;;  %s653_s13 = sand.u32 1, %s1153_s30  }
 0x26d   : > { %s654_s6 = scalar_lea.sflag [#allocation4], %s653_s13 }
 0x26e   : > { %p846_p5 = pnand %p861_p11, %p1315_p4 }
 0x270   : > { %p847_p6 = pneg %p846_p5 }
 0x272   : > { %1144 = dma.done.wait (%p847_p6), %s654_s6, 128  }
 0x273   : > { %1146 = vsyncadd (%p847_p6), %s654_s6, 4294967168  ;;  %s664_s24 = scalar_lea.sflag [#allocation13], %s653_s13 }
 0x274   : > { %1148 = dma.done.wait (%p847_p6), %s664_s24, 128  }
 0x275   : > { %1150 = vsyncadd (%p847_p6), %s664_s24, 4294967168  ;;  %p28_p2 = scmp.ge.s32.totalorder %s1285_s28, 5   ;;  %s1457_s30 = smov %s1157_s10 }
 0x276   : > { %s1458_s10 = smov %s1161_s11  ;;  %s1459_s11 = smov %s1296_s26 }
 0x277   : > { %s1460_s12 = smov %s1285_s28  ;;  %30 = sbr.rel (!%p28_p2) target bundleno = 14 (0xe), region = 130 }
 0x27c   :  { %670 = vsyncpa [#allocation3], 1 }
 0x27d   :  { %672 = vsyncpa [#allocation3 + $0x1], 1 }
 0x27e   :  { %673 = vsyncpa [#allocation6], 1 }
 0x27f   :  { %674 = vsyncpa [#allocation9], 1 }
 0x280   :  { %675 = vsyncpa [#allocation4], 1 }
 0x281   :  { %677 = vsyncpa [#allocation4 + $0x1], 1 }
 0x282   :  { %678 = vsyncpa [#allocation13], 1 }
 0x283   :  { %680 = vsyncpa [#allocation13 + $0x1], 1 }

// kernel: tpu_custom_call.1
= control target key start
LH: loop header
LB: loop body
LE: loop exit
PB: predicated region body
PF: predicated region fallthrough
CT: control target
= control target key end

     0   :  { %s1432_s0 = inlined_call_operand.hbm [shape: f32[24,128], index: 0, kind: input, shape index: {}]   ;;  %s1433_s1 = inlined_call_operand.hbm [shape: f32[1,128], index: 1, kind: input, shape index: {}]   ;;  %s1434_s2 = inlined_call_operand.hbm [shape: f32[128,128], index: 2, kind: input, shape index: {}]   ;;  %s1435_s3 = inlined_call_operand.vmem [shape: f32[1,128], index: 3, kind: input, shape index: {}]   ;;  %s1436_s4 = inlined_call_operand.hbm [shape: f32[128,128], index: 4, kind: input, shape index: {}]   ;;  %s1437_s5 = inlined_call_operand.vmem [shape: f32[1,128], index: 5, kind: input, shape index: {}]   ;;  %s1438_s6 = inlined_call_operand.hbm [shape: f32[128,256], index: 6, kind: input, shape index: {}]   ;;  %s1439_s7 = inlined_call_operand.vmem [shape: f32[1,256], index: 7, kind: input, shape index: {}]   ;;  %s1440_s8 = inlined_call_operand.hbm [shape: f32[24,128], index: 8, kind: output, shape index: {0}]   ;;  %s1441_s9 = inlined_call_operand.hbm [shape: f32[24,128], index: 9, kind: output, shape index: {1}]  }
   0x1   :  { %1442 = sst [smem:[#allocation19_spill]] %s1433_s1 }
   0x2   :  { %1443 = sst [smem:[#allocation20_spill]] %s1434_s2 }
   0x3   :  { %1444 = sst [smem:[#allocation21_spill]] %s1436_s4 }
   0x4   :  { %1445 = sst [smem:[#allocation22_spill]] %s1438_s6 }
   0x5   :  { %15 = vsyncpa [#allocation3], 0 }
   0x6   :  { %17 = vsyncpa [#allocation3 + $0x1], 0 }
   0x7   :  { %18 = vsyncpa [#allocation6], 0 }
   0x8   :  { %19 = vsyncpa [#allocation9], 0 }
   0x9   :  { %20 = vsyncpa [#allocation4], 0 }
   0xa   :  { %22 = vsyncpa [#allocation4 + $0x1], 0 }
   0xb   :  { %23 = vsyncpa [#allocation13], 0 }
   0xc   :  { %25 = vsyncpa [#allocation13 + $0x1], 0  ;;  %s1225_s30 = smov 0   ;;  %s1227_s10 = smov 0  }
   0xd   :  { %s1229_s11 = smov 0   ;;  %s1231_s12 = smov 0  }
   0xe LB: > { %s1446_s1 = sld [smem:[#allocation19_spill]]  ;;  %s1249_s16 = sadd.s32 4294967295, %s1165_s12   ;;  %s1165_s12 = sphi %s1231_s12, %s1460_s12   ;;  %s1161_s11 = sphi %s1229_s11, %s1459_s11   ;;  %s1157_s10 = sphi %s1227_s10, %s1458_s10   ;;  %s1153_s30 = sphi %s1225_s30, %s1457_s30  }
   0xf   : > { %p784_p0 = scmp.ge.s32.totalorder %s1165_s12, 1  ;;  %p52_p1 = scmp.eq.s32.totalorder %s1249_s16, 0 }
  0x10   : > { %p261_p2 = scmp.lt.s32.totalorder %s1165_s12, 4  ;;  %s1167_s18 = smov [#allocation5]  }
  0x11   : > { %s275_s19 = sshll.u32 %s1167_s18, 4  ;;  %s1448_s4 = sld [smem:[#allocation21_spill]]  ;;  %s276_s19 = int_to_ptr.vmem [resolvable:$true] %s275_s19 }
  0x12   : > { %p1254_p3 = pnand %p784_p0, %p261_p2  ;;  %s1450_s2 = sld [smem:[#allocation20_spill]] }
  0x13   : > { %s1168_s27 = smov [#allocation8]   ;;  %s1169_s29 = smov 128  }
  0x14   : > { %s273_s15 = sshll.u32 %s1446_s1, 4  ;;  %p828_p4 = pneg %p1254_p3  ;;  %s274_s15 = int_to_ptr.hbm [resolvable:$true] %s273_s15 }
  0x15   : > { %s303_s28 = sshll.u32 %s1168_s27, 4  ;;  %s1170_s13 = smov 8   ;;  %s304_s28 = int_to_ptr.vmem [resolvable:$true] %s303_s28 }
  0x16   : > { %p1265_p5 = pnand %p828_p4, %p52_p1  ;;  %s1451_s6 = sld [smem:[#allocation22_spill]] }
  0x17   : > { %s301_s22 = sshll.u32 %s1448_s4, 4  ;;  %s1171_s21 = smov [#allocation7]   ;;  %s302_s22 = int_to_ptr.hbm [resolvable:$true] %s301_s22 }
  0x18   : > { %s284_s26 = sshll.u32 %s1450_s2, 4  ;;  %s286_s24 = sshll.u32 %s1171_s21, 4  ;;  %s285_s26 = int_to_ptr.hbm [resolvable:$true] %s284_s26  ;;  %s287_s24 = int_to_ptr.vmem [resolvable:$true] %s286_s24 }
  0x19   : > { %831 = dma.hbm_to_vmem [thread:$0]  (!%p1265_p5), %s274_s15, 16, %s276_s19, [#allocation6]  }
  0x1a   : > { %837 = dma.hbm_to_vmem [thread:$0]  (!%p1265_p5), %s302_s22, 2048, %s304_s28, [#allocation9], %s1169_s29, %s1169_s29, %s1170_s13  }
  0x1b   : > { %834 = dma.hbm_to_vmem [thread:$0]  (!%p1265_p5), %s285_s26, 2048, %s287_s24, [#allocation6], %s1169_s29, %s1169_s29, %s1170_s13  }
  0x1c   : > { %s318_s20 = sshll.u32 %s1451_s6, 4  ;;  %s1172_s15 = smov [#allocation10]   ;;  %s319_s20 = int_to_ptr.hbm [resolvable:$true] %s318_s20 }
  0x1d   : > { %s320_s19 = sshll.u32 %s1172_s15, 4  ;;  %s1173_s22 = smov 256   ;;  %s321_s19 = int_to_ptr.vmem [resolvable:$true] %s320_s19 }
  0x1e   : > { %s1174_s25 = smov 16   ;;  %s783_s27 = sadd.s32 4294967294, %s1165_s12  }
  0x1f   : > { %840 = dma.hbm_to_vmem [thread:$0]  (!%p1265_p5), %s319_s20, 4096, %s321_s19, [#allocation9], %s1173_s22, %s1173_s22, %s1174_s25  }
  0x20   : > { %s1285_s28 = sadd.s32 1, %s1165_s12   ;;  %s38_s18 = sadd.s32 1, %s1161_s11 }
  0x21   : > { %s35_s14 = ssub.s32 %s1165_s12, %s1285_s28  ;;  %p45_p7 = scmp.ne.s32.totalorder %s1161_s11, %s1157_s10 }
  0x22   : > { %p36_p6 = scmp.eq.s32.totalorder %s35_s14, 0  ;;  %p46_p8 = scmp.eq.s32.totalorder %s1165_s12, 0 }
  0x23   : > { %p51_p9 = scmp.ne.s32.totalorder %s1157_s10, %s1153_s30  ;;  %p222_p12 = scmp.eq.s32.totalorder %s1249_s16, 2 }
  0x24   : > { %s1296_s26 = scalar_select %p36_p6, %s1161_s11, %s38_s18  }
  0x25   : > { %p1298_p10 = por %p46_p8, %p45_p7  ;;  %p1304_p11 = por %p52_p1, %p51_p9 }
  0x26   : > { %p228_p13 = scmp.eq.s32.totalorder %s783_s27, 2  ;;  %p856_p0 = scmp.lt.s32.totalorder %s1165_s12, 3 }
  0x27   : > { %s337_s13 = sand.u32 1, %s1161_s11   ;;  %p1311_p2 = por %p222_p12, %p45_p7 }
  0x28   : > { %p1315_p4 = por %p228_p13, %p51_p9  ;;  %s790_s24 = sshll.u32 %s337_s13, 3 }
  0x29   : > { %s791_s15 = sshll.u32 %s1165_s12, 3  ;;  %s341_s14 = scalar_lea.vmem [#allocation2], %s790_s24 }
  0x2a   : > { %s345_s25 = scalar_lea.hbm %s1432_s0, %s791_s15  ;;  %s349_s18 = sshll.u32 %s341_s14, 4  ;;  %s350_s18 = int_to_ptr.vmem [resolvable:$true] %s349_s18 }
  0x2b   : > { %s347_s1 = sshll.u32 %s345_s25, 4  ;;  %p1325_p5 = pnand %p856_p0, %p1298_p10  ;;  %s348_s1 = int_to_ptr.hbm [resolvable:$true] %s347_s1 }
  0x2c   : > { %s338_s2 = scalar_lea.sflag [#allocation3], %s337_s13  ;;  %s1029_s4 = sshra.s32 %s348_s1, 4  ;;  %s1030_s4 = int_to_ptr.hbm [resolvable:$true] %s1029_s4 }
  0x2d   : > { %s1031_s6 = scalar_lea.hbm %s1030_s4, 8  ;;  %p1033_p7 = pneg %p1325_p5 }
  0x2e   : > { %p1032_p6 = scmp.ne.s32.totalorder %s1030_s4, %s1031_s6  ;;  %s1036_s19 = scalar_lea.hbm %s1432_s0, 24 }
  0x2f   : > { %p1037_p10 = scmp.lt.s32.totalorder %s1030_s4, %s1432_s0  ;;  %p1038_p12 = scmp.lt.s32.totalorder %s1036_s19, %s1031_s6 }
  0x30   : > { %p1034_p8 = pnand %p1033_p7, %p1032_p6 }
  0x31   : > { %p1039_p13 = por %p1038_p12, %p1037_p10 }
  0x32   : > { %p1035_p9 = pneg %p1034_p8 }
  0x34   : > { %p1040_p0 = pnand %p1039_p13, %p1035_p9 }
  0x36   : > { %1043 = shalt.err (!%p1040_p0)
}
  0x37   : > { %844 = dma.hbm_to_vmem [thread:$0]  (!%p1325_p5), %s348_s1, 128, %s350_s18, %s338_s2  }
  0x38   : > { %358 = sbr.rel (%p1254_p3) target bundleno = 620 (0x26c), region = 52  ;;  %s1342_s13 = sand.u32 (!%p1254_p3), 1, %s1157_s10  }
  0x39   : > { %s1345_s25 = sshll.u32 (!%p1254_p3), %s1342_s13, 3  ;;  %s361_s4 = scalar_lea.sflag (!%p1254_p3), [#allocation3], %s1342_s13 }
  0x3a   : > { %s364_s6 = scalar_lea.vmem (!%p1254_p3), [#allocation2], %s1345_s25 }
  0x3d   : > { %1132 = dma.done.wait (%p1304_p11), %s361_s4, 128  }
  0x3e   : > { %1134 = vsyncadd (%p1304_p11), %s361_s4, 4294967168 }
  0x3f   : > { %1136 = dma.done.wait (%p52_p1), [#allocation6], 2064  }
  0x40   : > { %1138 = vsyncadd (%p52_p1), [#allocation6], 4294965232 }
  0x41   : > { %1140 = dma.done.wait (%p52_p1), [#allocation9], 6144  }
  0x42   : > { %1142 = vsyncadd (%p52_p1), [#allocation9], 4294961152  ;;  %v447_v0 = vld [vmem:[#allocation7 + $0x78] sm:$0xff]  ;;  %v446_v1 = vld [vmem:[#allocation7 + $0x70] sm:$0xff]  ;;  %s802_s27 = sshll.u32 %s1249_s16, 3  ;;  %s417_s22 = scalar_lea.vmem [#allocation11], %s1345_s25 }
  0x43   : > { %452 = vmatpush.msra.mxu0 %v447_v0  ;;  %v445_v2 = vld [vmem:[#allocation7 + $0x68] sm:$0xff]  ;;  %v444_v3 = vld [vmem:[#allocation7 + $0x60] sm:$0xff]  ;;  %v443_v4 = vld [vmem:[#allocation7 + $0x58] sm:$0xff]  ;;  %s623_s19 = scalar_lea.hbm %s1440_s8, %s802_s27  ;;  %s625_s29 = sshll.u32 %s417_s22, 4  ;;  %s626_s29 = int_to_ptr.vmem [resolvable:$true] %s625_s29 }
  0x44   : > { %v488_v5 = vld [vmem:[#allocation8 + $0x78] sm:$0xff]  ;;  %v487_v6 = vld [vmem:[#allocation8 + $0x70] sm:$0xff]  ;;  %v486_v8 = vld [vmem:[#allocation8 + $0x68] sm:$0xff]  ;;  %s627_s4 = sshll.u32 %s623_s19, 4  ;;  %s1079_s14 = scalar_lea.hbm %s1440_s8, 24  ;;  %s628_s4 = int_to_ptr.hbm [resolvable:$true] %s627_s4 }
  0x45   : > { %453 = vmatpush.msra.mxu0 %v446_v1  ;;  %493 = vmatpush.msra.mxu1 %v488_v5  ;;  %v442_v7 = vld [vmem:[#allocation7 + $0x50] sm:$0xff]  ;;  %v441_v9 = vld [vmem:[#allocation7 + $0x48] sm:$0xff]  ;;  %v485_v10 = vld [vmem:[#allocation8 + $0x60] sm:$0xff]  ;;  %s1073_s1 = sshra.s32 %s628_s4, 4  ;;  %s1074_s1 = int_to_ptr.hbm [resolvable:$true] %s1073_s1 }
  0x46   : > { %v440_v11 = vld [vmem:[#allocation7 + $0x40] sm:$0xff]  ;;  %v484_v12 = vld [vmem:[#allocation8 + $0x58] sm:$0xff]  ;;  %v483_v14 = vld [vmem:[#allocation8 + $0x50] sm:$0xff]  ;;  %s1075_s2 = scalar_lea.hbm %s1074_s1, 8  ;;  %p1080_p5 = scmp.lt.s32.totalorder %s1074_s1, %s1440_s8 }
  0x47   : > { %454 = vmatpush.msra.mxu0 %v445_v2  ;;  %494 = vmatpush.msra.mxu1 %v487_v6  ;;  %v439_v13 = vld [vmem:[#allocation7 + $0x38] sm:$0xff]  ;;  %v438_v15 = vld [vmem:[#allocation7 + $0x30] sm:$0xff]  ;;  %v482_v16 = vld [vmem:[#allocation8 + $0x48] sm:$0xff]  ;;  %p1076_p1 = scmp.ne.s32.totalorder %s1074_s1, %s1075_s2  ;;  %p1081_p6 = scmp.lt.s32.totalorder %s1079_s14, %s1075_s2 }
  0x48   : > { %v437_v17 = vld [vmem:[#allocation7 + $0x28] sm:$0xff]  ;;  %v481_v18 = vld [vmem:[#allocation8 + $0x40] sm:$0xff]  ;;  %v480_v20 = vld [vmem:[#allocation8 + $0x38] sm:$0xff] }
  0x49   : > { %455 = vmatpush.msra.mxu0 %v444_v3  ;;  %495 = vmatpush.msra.mxu1 %v486_v8  ;;  %v436_v19 = vld [vmem:[#allocation7 + $0x20] sm:$0xff]  ;;  %v435_v21 = vld [vmem:[#allocation7 + $0x18] sm:$0xff]  ;;  %v479_v22 = vld [vmem:[#allocation8 + $0x30] sm:$0xff]  ;;  %p1077_p3 = pnand %p1076_p1, %p1311_p2  ;;  %p1082_p7 = por %p1081_p6, %p1080_p5 }
  0x4a   : > { %v434_v23 = vld [vmem:[#allocation7 + $0x10] sm:$0xff]  ;;  %v902_v24 = vld [vmem:[#allocation5] ss:$0 sm:$0xff]  ;;  %v478_v25 = vld [vmem:[#allocation8 + $0x28] sm:$0xff] }
  0x4b   : > { %456 = vmatpush.msra.mxu0 %v443_v4  ;;  %496 = vmatpush.msra.mxu1 %v485_v10  ;;  %v1363_v26 = vld [vmem:[%s364_s6] sm:$0xff]  ;;  %v477_v28 = vld [vmem:[#allocation8 + $0x20] sm:$0xff]  ;;  %s608_s6 = scalar_lea.sflag [#allocation4], %s1342_s13  ;;  %p1078_p11 = pneg %p1077_p3 }
  0x4c   : > { %v433_v27 = vld [vmem:[#allocation7 + $0x8] sm:$0xff]  ;;  %v432_v29 = vld [vmem:[#allocation7] sm:$0xff]  ;;  %v1366_v30 = vmul.f32 %v902_v24, %v1363_v26  ;;  %v476_v31 = vld [vmem:[#allocation8 + $0x18] sm:$0xff] }
  0x4d   : > { %457 = vmatpush.msra.mxu0 %v442_v7  ;;  %497 = vmatpush.msra.mxu1 %v484_v12  ;;  %v475_v32 = vld [vmem:[#allocation8 + $0x10] sm:$0xff]  ;;  %v474_v33 = vld [vmem:[#allocation8 + $0x8] sm:$0xff]  ;;  %v473_v34 = vld [vmem:[#allocation8] sm:$0xff]  ;;  %p1083_p8 = pnand %p1082_p7, %p1078_p11 }
  0x4e   : > { %v544_v35 = vld [vmem:[#allocation10 + $0xf0] sm:$0xff]  ;;  %v545_v36 = vld [vmem:[#allocation10 + $0xf8] sm:$0xff]  ;;  %v542_v37 = vld [vmem:[#allocation10 + $0xe0] sm:$0xff] }
  0x4f   : > { %458 = vmatpush.msra.mxu0 %v441_v9  ;;  %498 = vmatpush.msra.mxu1 %v483_v14  ;;  %v543_v38 = vld [vmem:[#allocation10 + $0xe8] sm:$0xff]  ;;  %v540_v39 = vld [vmem:[#allocation10 + $0xd0] sm:$0xff]  ;;  %v541_v40 = vld [vmem:[#allocation10 + $0xd8] sm:$0xff] }
  0x50   : > { %552 = vmatpush.msra.mxu2 %v544_v35  ;;  %572 = vmatpush.msra.mxu3 %v545_v36  ;;  %v538_v41 = vld [vmem:[#allocation10 + $0xc0] sm:$0xff]  ;;  %v539_v42 = vld [vmem:[#allocation10 + $0xc8] sm:$0xff]  ;;  %v536_v43 = vld [vmem:[#allocation10 + $0xb0] sm:$0xff] }
  0x51   : > { %459 = vmatpush.msra.mxu0 %v440_v11  ;;  %499 = vmatpush.msra.mxu1 %v482_v16  ;;  %v537_v44 = vld [vmem:[#allocation10 + $0xb8] sm:$0xff]  ;;  %v534_v45 = vld [vmem:[#allocation10 + $0xa0] sm:$0xff]  ;;  %v535_v46 = vld [vmem:[#allocation10 + $0xa8] sm:$0xff] }
  0x52   : > { %553 = vmatpush.msra.mxu2 %v542_v37  ;;  %573 = vmatpush.msra.mxu3 %v543_v38  ;;  %v532_v47 = vld [vmem:[#allocation10 + $0x90] sm:$0xff]  ;;  %v533_v48 = vld [vmem:[#allocation10 + $0x98] sm:$0xff]  ;;  %v530_v49 = vld [vmem:[#allocation10 + $0x80] sm:$0xff] }
  0x53   : > { %460 = vmatpush.msra.mxu0 %v439_v13  ;;  %500 = vmatpush.msra.mxu1 %v481_v18  ;;  %v531_v50 = vld [vmem:[#allocation10 + $0x88] sm:$0xff]  ;;  %v528_v51 = vld [vmem:[#allocation10 + $0x70] sm:$0xff]  ;;  %v529_v52 = vld [vmem:[#allocation10 + $0x78] sm:$0xff] }
  0x54   : > { %554 = vmatpush.msra.mxu2 %v540_v39  ;;  %574 = vmatpush.msra.mxu3 %v541_v40  ;;  %v526_v53 = vld [vmem:[#allocation10 + $0x60] sm:$0xff]  ;;  %v527_v54 = vld [vmem:[#allocation10 + $0x68] sm:$0xff]  ;;  %v524_v55 = vld [vmem:[#allocation10 + $0x50] sm:$0xff] }
  0x55   : > { %461 = vmatpush.msra.mxu0 %v438_v15  ;;  %501 = vmatpush.msra.mxu1 %v480_v20  ;;  %v525_v56 = vld [vmem:[#allocation10 + $0x58] sm:$0xff]  ;;  %v522_v57 = vld [vmem:[#allocation10 + $0x40] sm:$0xff]  ;;  %v523_v58 = vld [vmem:[#allocation10 + $0x48] sm:$0xff] }
  0x56   : > { %555 = vmatpush.msra.mxu2 %v538_v41  ;;  %575 = vmatpush.msra.mxu3 %v539_v42  ;;  %v520_v59 = vld [vmem:[#allocation10 + $0x30] sm:$0xff]  ;;  %v521_v60 = vld [vmem:[#allocation10 + $0x38] sm:$0xff]  ;;  %v903_v61 = vld [vmem:[%s1435_s3] ss:$0 sm:$0xff] }
  0x57   : > { %462 = vmatpush.msra.mxu0 %v437_v17  ;;  %502 = vmatpush.msra.mxu1 %v479_v22  ;;  %v518_v1 = vld [vmem:[#allocation10 + $0x20] sm:$0xff]  ;;  %v519_v2 = vld [vmem:[#allocation10 + $0x28] sm:$0xff]  ;;  %v516_v3 = vld [vmem:[#allocation10 + $0x10] sm:$0xff] }
  0x58   : > { %556 = vmatpush.msra.mxu2 %v536_v43  ;;  %576 = vmatpush.msra.mxu3 %v537_v44  ;;  %v517_v4 = vld [vmem:[#allocation10 + $0x18] sm:$0xff]  ;;  %v514_v5 = vld [vmem:[#allocation10] sm:$0xff]  ;;  %v515_v6 = vld [vmem:[#allocation10 + $0x8] sm:$0xff] }
  0x59   : > { %463 = vmatpush.msra.mxu0 %v436_v19  ;;  %503 = vmatpush.msra.mxu1 %v478_v25  ;;  %v904_v7 = vld [vmem:[%s1437_s5] ss:$0 sm:$0xff]  ;;  %v426_v13 = vld [vmem:[#allocation5] sm:$0x1] }
  0x5a   : > { %557 = vmatpush.msra.mxu2 %v534_v45  ;;  %577 = vmatpush.msra.mxu3 %v535_v46  ;;  %v546_v11 = vld [vmem:[%s1439_s7] sm:$0x3]  ;;  %v427_v16 = vsub.f32 1.0, %v426_v13 }
  0x5b   : > { %464 = vmatpush.msra.mxu0 %v435_v21  ;;  %504 = vmatpush.msra.mxu1 %v477_v28  ;;  %v549_v12 = vperm.slane %v546_v11, 1  ;;  %v548_v21 = vperm.slane %v546_v11, 0 }
  0x5c   : > { %558 = vmatpush.msra.mxu2 %v532_v47  ;;  %578 = vmatpush.msra.mxu3 %v533_v48  ;;  %v598_v17 = vperm.slane %v427_v16, 0 }
  0x5d   : > { %465 = vmatpush.msra.mxu0 %v434_v23  ;;  %505 = vmatpush.msra.mxu1 %v476_v31 }
  0x5e   : > { %559 = vmatpush.msra.mxu2 %v530_v49  ;;  %579 = vmatpush.msra.mxu3 %v531_v50 }
  0x5f   : > { %466 = vmatpush.msra.mxu0 %v433_v27  ;;  %506 = vmatpush.msra.mxu1 %v475_v32 }
  0x60   : > { %560 = vmatpush.msra.mxu2 %v528_v51  ;;  %580 = vmatpush.msra.mxu3 %v529_v52 }
  0x61   : > { %467 = vmatpush.msra.mxu0 %v432_v29  ;;  %507 = vmatpush.msra.mxu1 %v474_v33 }
  0x62   : > { %468 = vmatmul.f32.vlgmr.msra.gmra.mxu0 %v1366_v30  ;;  %561 = vmatpush.msra.mxu2 %v526_v53 }
  0x63   : > { %508 = vmatpush.msra.mxu1 %v473_v34  ;;  %581 = vmatpush.msra.mxu3 %v527_v54 }
  0x64   : > { %562 = vmatpush.msra.mxu2 %v524_v55 }
  0x65   : > { %582 = vmatpush.msra.mxu3 %v525_v56 }
  0x66   : > { %563 = vmatpush.msra.mxu2 %v522_v57 }
  0x67   : > { %583 = vmatpush.msra.mxu3 %v523_v58 }
  0x68   : > { %564 = vmatpush.msra.mxu2 %v520_v59 }
  0x69   : > { %584 = vmatpush.msra.mxu3 %v521_v60 }
  0x6a   : > { %565 = vmatpush.msra.mxu2 %v518_v1 }
  0x6b   : > { %585 = vmatpush.msra.mxu3 %v519_v2 }
  0x6c   : > { %566 = vmatpush.msra.mxu2 %v516_v3 }
  0x6d   : > { %586 = vmatpush.msra.mxu3 %v517_v4 }
  0x6e   : > { %567 = vmatpush.msra.mxu2 %v514_v5 }
  0x6f   : > { %587 = vmatpush.msra.mxu3 %v515_v6 }
  0xdf   : > { %v469_v62 = vpop.f32.mrf.mxu0 }
  0xe0   : > { %v470_v63 = vadd.f32 %v903_v61, %v469_v62 }
  0xe2   : > { %v472_v0 = vmax.f32 %v470_v63, 0.0 }
  0xe4   : > { %509 = vmatmul.f32.vlgmr.msra.gmra.mxu1 %v472_v0 }
 0x161   : > { %v510_v8 = vpop.f32.mrf.mxu1 }
 0x162   : > { %v511_v9 = vadd.f32 %v904_v7, %v510_v8 }
 0x164   : > { %v513_v10 = vmax.f32 %v511_v9, 0.0 }
 0x166   : > { %568 = vmatmul.f32.vlgmr.msra.gmra.mxu2 %v513_v10  ;;  %588 = vmatmul.f32.vlgmr.msra.gmra.mxu3 %v513_v10 }
 0x1e9   : > { %v589_v14 = vpop.f32.mrf.mxu3  ;;  %v569_v22 = vpop.f32.mrf.mxu2 }
 0x1ea   : > { %v590_v15 = vadd.f32 %v589_v14, %v549_v12  ;;  %v570_v24 = vadd.f32 %v569_v22, %v548_v21 }
 0x1ec   : > { %905 = vtanh.f32 %v590_v15 }
 0x1f2   : > { %v906_v18 = vpop.eup %905 }
 0x1f3   : > { %v593_v19 = vmul.f32 1.442695, %v906_v18  ;;  %v603_v20 = vmul.f32 %v906_v18, %v598_v17 }
 0x1f5   : > { %907 = vpow2.f32 %v593_v19  ;;  %604 = vadd.xlane.f32.xlu0 %v603_v20 }
 0x1fb   : > { %v908_v23 = vpop.eup %907 }
 0x1fc   : > { %v595_v25 = vmul.f32 %v908_v23, %v1363_v26 }
 0x1fe   : > { %v596_v27 = vadd.f32 %v595_v25, %v570_v24 }
 0x200   : > { %v600_v28 = vmul.f32 %v598_v17, %v596_v27 }
 0x202   : > { %v601_v29 = vadd.f32 %v600_v28, %v1366_v30 }
 0x204   : > { %602 = vst [vmem:[%s417_s22] sm:$0xff] %v601_v29 }
 0x205   : > { %1086 = shalt.err (!%p1083_p8)
}
 0x206   : > { %824 = dma.vmem_to_hbm [thread:$0]  (%p1311_p2), %s626_s29, 128, %s628_s4, %s608_s6  }
 0x207   : > { %s637_s22 = scalar_lea.hbm %s1441_s9, %s802_s27  ;;  %s424_s17 = scalar_lea.vmem [#allocation12], %s1345_s25 }
 0x208   : > { %s639_s23 = sshll.u32 %s424_s17, 4  ;;  %s641_s18 = sshll.u32 %s637_s22, 4  ;;  %s640_s23 = int_to_ptr.vmem [resolvable:$true] %s639_s23  ;;  %s642_s18 = int_to_ptr.hbm [resolvable:$true] %s641_s18 }
 0x209   : > { %s613_s1 = scalar_lea.sflag [#allocation13], %s1342_s13  ;;  %s1101_s2 = sshra.s32 %s642_s18, 4  ;;  %s1102_s2 = int_to_ptr.hbm [resolvable:$true] %s1101_s2 }
 0x20a   : > { %s1103_s14 = scalar_lea.hbm %s1102_s2, 8  ;;  %s1107_s4 = scalar_lea.hbm %s1441_s9, 24 }
 0x20b   : > { %p1104_p9 = scmp.ne.s32.totalorder %s1102_s2, %s1103_s14  ;;  %p1108_p13 = scmp.lt.s32.totalorder %s1102_s2, %s1441_s9 }
 0x20c   : > { %p1109_p0 = scmp.lt.s32.totalorder %s1107_s4, %s1103_s14 }
 0x20d   : > { %p1105_p10 = pnand %p1104_p9, %p1311_p2 }
 0x20e   : > { %p1110_p1 = por %p1109_p0, %p1108_p13 }
 0x20f   : > { %p1106_p12 = pneg %p1105_p10 }
 0x211   : > { %p1111_p3 = pnand %p1110_p1, %p1106_p12 }
 0x268   : > { %v605_v26 = vpop.xlane.xlu0 %604 }
 0x269   : > { %606 = vst [vmem:[%s424_s17] sm:$0xff] %v605_v26 }
 0x26a   : > { %1114 = shalt.err (!%p1111_p3)
}
 0x26b   : > { %825 = dma.vmem_to_hbm [thread:$0]  (%p1311_p2), %s640_s23, 128, %s642_s18, %s613_s1  }
 0x26c PF: > { %p861_p11 = scmp.ge.s32.totalorder %s1165_s12, 2  ;;  %s653_s13 = sand.u32 1, %s1153_s30  }
 0x26d   : > { %s654_s6 = scalar_lea.sflag [#allocation4], %s653_s13 }
 0x26e   : > { %p846_p5 = pnand %p861_p11, %p1315_p4 }
 0x270   : > { %p847_p6 = pneg %p846_p5 }
 0x272   : > { %1144 = dma.done.wait (%p847_p6), %s654_s6, 128  }
 0x273   : > { %1146 = vsyncadd (%p847_p6), %s654_s6, 4294967168  ;;  %s664_s24 = scalar_lea.sflag [#allocation13], %s653_s13 }
 0x274   : > { %1148 = dma.done.wait (%p847_p6), %s664_s24, 128  }
 0x275   : > { %1150 = vsyncadd (%p847_p6), %s664_s24, 4294967168  ;;  %p28_p2 = scmp.ge.s32.totalorder %s1285_s28, 5   ;;  %s1457_s30 = smov %s1157_s10 }
 0x276   : > { %s1458_s10 = smov %s1161_s11  ;;  %s1459_s11 = smov %s1296_s26 }
 0x277   : > { %s1460_s12 = smov %s1285_s28  ;;  %30 = sbr.rel (!%p28_p2) target bundleno = 14 (0xe), region = 130 }
 0x27c   :  { %670 = vsyncpa [#allocation3], 1 }
 0x27d   :  { %672 = vsyncpa [#allocation3 + $0x1], 1 }
 0x27e   :  { %673 = vsyncpa [#allocation6], 1 }
 0x27f   :  { %674 = vsyncpa [#allocation9], 1 }
 0x280   :  { %675 = vsyncpa [#allocation4], 1 }
 0x281   :  { %677 = vsyncpa [#allocation4 + $0x1], 1 }
 0x282   :  { %678 = vsyncpa [#allocation13], 1 }
 0x283   :  { %680 = vsyncpa [#allocation13 + $0x1], 1 }

</bundles_post_ra>
